<compile_context>
chip_gen: v7x
topology: tpu7x:2x2x1
jax: 0.10.0
libtpu: 0.0.40
codegen_flags: <defaults>
</compile_context>

<pallas_src>
import numpy as np
import jax
import jax.numpy as jnp
from jax import lax
from jax.experimental import pallas as pl
from jax.experimental.pallas import tpu as pltpu


# ----------------------------------------------------------------------------
# Small helpers
# ----------------------------------------------------------------------------
def _lane_padded(n, multiple=128):
    return ((n + multiple - 1) // multiple) * multiple


def _choose_batch_block(N, max_blk=8):
    """Largest divisor of N <= max_blk that still leaves >= 2 grid steps."""
    best = 1
    for b in range(1, min(N, max_blk) + 1):
        if N % b == 0 and (N // b >= 2 or N == 1):
            best = b
    return best


def _vmem_limit_bytes(B_blk, C, Crh, L, Lp, margin, cbytes=2):
    io_block = B_blk * C * Lp * 4
    total = 2 * io_block * 2                        # in + out, double-buffered
    total += 2 * L * 9 * Crh * C * cbytes           # conv3x3 tap matrices
    total += 2 * L * C * Crh * cbytes               # conv1x1 matrices
    total += 2 * Lp * 4                             # interior mask
    total += C * (Lp + 2 * margin) * cbytes         # hbuf scratch (bf16)
    total += 2 * Crh * Lp * 4 + C * Lp * (4 + 2)    # live-value headroom
    return int(min(max(2 * total, 16 << 20), 64 << 20))


# ----------------------------------------------------------------------------
# Fused whole-stack kernel (one grid step == B_blk images)
# ----------------------------------------------------------------------------
def _make_stack_kernel(num_layers, batch_blk, C, Crh, Lp, margin, deltas,
                       compute_dtype):
    def kernel(x_ref, w1_ref, w2_ref, mask_ref, o_ref, hbuf):
        # Margins only ever feed masked-out (non-interior) output columns, and
        # the jnp.where masking below is NaN-safe, so this zeroing is hygiene,
        # not a correctness dependency.  Scratch persists across grid steps ->
        # do it once.
        @pl.when(pl.program_id(0) == 0)
        def _():
            zeros_m = jnp.zeros((C, margin), compute_dtype)
            hbuf[:, :margin] = zeros_m
            hbuf[:, margin + Lp:] = zeros_m

        # Hoisted out of the unrolled loops (JAX does not CSE broadcasts).
        mask_b = jnp.broadcast_to(mask_ref[...] > 0.5, (Crh, Lp))

        for b in range(batch_blk):                  # static; batch_blk small
            x = x_ref[b]                            # (C, Lp) f32 residual carry
            # TODO(synk): for num_residual_layers >= ~6, switch this static
            # unroll to lax.fori_loop with dynamic w1_ref/w2_ref indexing.
            for i in range(num_layers):
                h = jnp.maximum(x, 0.0).astype(compute_dtype)    # (C, Lp) bf16
                hbuf[:, margin:margin + Lp] = h
                # 3x3 conv = 9 accumulating K=C dots that read shifted bf16
                # hbuf slices directly (no im2col temporary).
                acc = None
                for k, d in enumerate(deltas):
                    tap = h if d == 0 else hbuf[:, margin + d: margin + d + Lp]
                    p = jnp.dot(w1_ref[i, k], tap,
                                preferred_element_type=jnp.float32)  # (Crh, Lp)
                    acc = p if acc is None else acc + p
                # ReLU, then zero every non-interior column (NaN-safe select
                # keeps halo/tail lanes exactly zero in the residual carry).
                t1 = jnp.where(mask_b, jnp.maximum(acc, 0.0), 0.0)
                z = jnp.dot(w2_ref[i], t1.astype(compute_dtype),
                            preferred_element_type=jnp.float32)      # (C, Lp)
                x = x + z                                            # residual
            o_ref[b] = jnp.maximum(x, 0.0)                           # final ReLU

    return kernel


def resnet_stack_forward(prepared, x_nchw):
    """ResnetStack forward.  x_nchw: (N, C, H, W) f32; prepared: prepare_params()."""
    w1_taps = prepared["w1_taps"]            # (L, 9, Crh, C)  bf16
    w2_mats = prepared["w2_mats"]            # (L, C, Crh)     bf16
    N, C, H, W = x_nchw.shape
    L, _, Crh, _ = w1_taps.shape
    compute_dtype = w1_taps.dtype

    Hp, Wp = H + 2, W + 2                    # true conv halo only
    L_frame = Hp * Wp
    Lp = _lane_padded(L_frame)               # flattened axis rounded to 128
    margin = _lane_padded(Wp + 1)            # >= largest tap shift, 128-aligned
    B_blk = _choose_batch_block(N)

    # Pad once (zeros become the conv halo), flatten spatial onto the lane
    # axis, then zero-pad the tail lanes up to Lp.
    xp = jnp.pad(x_nchw.astype(jnp.float32), ((0, 0), (0, 0), (1, 1), (1, 1)))
    xp = xp.reshape(N, C, L_frame)
    xp = jnp.pad(xp, ((0, 0), (0, 0), (0, Lp - L_frame)))

    # Interior mask over the flattened lane axis (compile-time constant).
    idx = np.arange(Lp)
    rows, cols = idx // Wp, idx % Wp
    interior = ((idx < L_frame) & (rows >= 1) & (rows <= H)
                & (cols >= 1) & (cols <= W))
    mask = jnp.asarray(interior.astype(np.float32)).reshape(1, Lp)

    # Flat-index shift of each 3x3 tap (kh outer, kw inner -> matches weights).
    deltas = [(kh - 1) * Wp + (kw - 1) for kh in range(3) for kw in range(3)]

    kernel = _make_stack_kernel(L, B_blk, C, Crh, Lp, margin, deltas,
                                compute_dtype)
    vmem_limit = _vmem_limit_bytes(B_blk, C, Crh, L, Lp, margin)

    out_flat = pl.pallas_call(
        kernel,
        out_shape=jax.ShapeDtypeStruct((N, C, Lp), jnp.float32),
        grid_spec=pltpu.PrefetchScalarGridSpec(
            num_scalar_prefetch=0,
            grid=(N // B_blk,),
            in_specs=[
                pl.BlockSpec((B_blk, C, Lp), lambda n: (n, 0, 0)),      # acts
                pl.BlockSpec((L, 9, Crh, C), lambda n: (0, 0, 0, 0)),   # 3x3 taps
                pl.BlockSpec((L, C, Crh), lambda n: (0, 0, 0)),         # 1x1 mats
                pl.BlockSpec((1, Lp), lambda n: (0, 0)),                # mask
            ],
            out_specs=pl.BlockSpec((B_blk, C, Lp), lambda n: (n, 0, 0)),
            scratch_shapes=[pltpu.VMEM((C, Lp + 2 * margin), compute_dtype)]),
        compiler_params=pltpu.CompilerParams(
            dimension_semantics=("parallel",),
            vmem_limit_bytes=vmem_limit),
    )(xp, w1_taps, w2_mats, mask)

    out = out_flat[:, :, :L_frame].reshape(N, C, Hp, Wp)[:, :, 1:1 + H, 1:1 + W]
    return out


# ----------------------------------------------------------------------------
# Params (PyTorch OIHW layout) + hoisted repacking, and a pure-JAX reference
# ----------------------------------------------------------------------------
def init_params(key, in_channels, num_hiddens, num_residual_layers,
                num_residual_hiddens):
    """Bias-free conv weights in PyTorch OIHW layout, exactly as nn.Conv2d holds."""
    assert in_channels == num_hiddens, "residual add requires in == out channels"
    k1, k2 = jax.random.split(key)
    s = 0.05
    w1 = s * jax.random.normal(
        k1, (num_residual_layers, num_residual_hiddens, in_channels, 3, 3),
        jnp.float32)
    w2 = s * jax.random.normal(
        k2, (num_residual_layers, num_hiddens, num_residual_hiddens, 1, 1),
        jnp.float32)
    return {"w1": w1, "w2": w2}


def prepare_params(params, compute_dtype=jnp.bfloat16):
    """One-time weight repacking (hoisted out of the forward path)."""
    w1 = params["w1"]                                    # (L, Crh, C, 3, 3)
    L, Crh, C, _, _ = w1.shape
    # Per-tap (Crh, C) matrices; tap index = kh*3 + kw matches `deltas` order.
    w1_taps = jnp.transpose(w1, (0, 3, 4, 1, 2)).reshape(L, 9, Crh, C)
    w2_mats = params["w2"][:, :, :, 0, 0]                # (L, C, Crh)
    return {"w1_taps": w1_taps.astype(compute_dtype),
            "w2_mats": w2_mats.astype(compute_dtype)}


def resnet_stack_reference(params, x_nchw):
    dn = ("NCHW", "OIHW", "NCHW")
    w1, w2 = params["w1"], params["w2"]
    x = x_nchw
    for i in range(w1.shape[0]):
        h = jax.nn.relu(x)
        h = lax.conv_general_dilated(h, w1[i], (1, 1), ((1, 1), (1, 1)),
                                     dimension_numbers=dn)
        h = jax.nn.relu(h)
        h = lax.conv_general_dilated(h, w2[i], (1, 1), ((0, 0), (0, 0)),
                                     dimension_numbers=dn)
        x = x + h
    return jax.nn.relu(x)


if __name__ == "__main__":
    in_channels = 32          # must equal num_hiddens for the residual add
    num_hiddens = 32
    num_residual_layers = 2
    num_residual_hiddens = 16
    N, H, W = 2, 16, 16

    key = jax.random.PRNGKey(0)
    kp, kx = jax.random.split(key)
    params = init_params(kp, in_channels, num_hiddens, num_residual_layers,
                         num_residual_hiddens)
    prepared = prepare_params(params)          # hoisted: runs once, not per call

    x = jax.random.normal(kx, (N, in_channels, H, W), jnp.float32)

    fwd = jax.jit(resnet_stack_forward)
    out = jax.block_until_ready(fwd(prepared, x))

    ref = jax.block_until_ready(resnet_stack_reference(params, x))

    assert out.shape == (N, num_hiddens, H, W), out.shape
    # bf16 MXU operands with f32 accumulation -> small (few-e-3) deviations.
    np.testing.assert_allclose(np.asarray(out), np.asarray(ref),
                               rtol=1e-2, atol=1e-2)
    print("KERNEL_OK")
</pallas_src>

<mosaic_0001>
module attributes {stable_mosaic.version = 11 : i64} {
  func.func @kernel(%arg0: i32, %arg1: memref<1x32x384xf32, #tpu.memory_space<vmem>>, %arg2: memref<2x9x16x32xbf16, #tpu.memory_space<vmem>>, %arg3: memref<2x32x16xbf16, #tpu.memory_space<vmem>>, %arg4: memref<1x384xf32, #tpu.memory_space<vmem>>, %arg5: memref<1x32x384xf32, #tpu.memory_space<vmem>>, %arg6: memref<32x640xbf16, #tpu.memory_space<vmem>>) attributes {dimension_semantics = [#tpu.dimension_semantics<parallel>], iteration_bounds = array<i64: 2>, scalar_prefetch = 0 : i64, scratch_operands = 1 : i64, tpu.core_type = #tpu.core_type<tc>, window_params = [{transform_indices = @transform_0, window_bounds = array<i64: 1, 32, 384>}, {pipeline_mode = #tpu.pipeline_mode<synchronous>, transform_indices = @transform_1, window_bounds = array<i64: 2, 9, 16, 32>}, {pipeline_mode = #tpu.pipeline_mode<synchronous>, transform_indices = @transform_2, window_bounds = array<i64: 2, 32, 16>}, {pipeline_mode = #tpu.pipeline_mode<synchronous>, transform_indices = @transform_3, window_bounds = array<i64: 1, 384>}, {transform_indices = @transform_4, window_bounds = array<i64: 1, 32, 384>}]} {
    %c0_i32 = arith.constant 0 : i32
    %0 = arith.cmpi eq, %arg0, %c0_i32 : i32
    %1 = arith.extui %0 : i1 to i32
    %c0_i32_0 = arith.constant 0 : i32
    %2 = arith.cmpi ne, %1, %c0_i32_0 : i32
    scf.if %2 {
      %cst_132 = arith.constant 0.000000e+00 : bf16
      %127 = vector.broadcast %cst_132 : bf16 to vector<32x128xbf16>
      %c0_133 = arith.constant 0 : index
      %c0_134 = arith.constant 0 : index
      %128 = vector.load %arg6[%c0_133, %c0_134] : memref<32x640xbf16, #tpu.memory_space<vmem>>, vector<32x128xbf16>
      tpu.vector_store %arg6[%c0_133, %c0_134], %127 {strides = array<i32>} : memref<32x640xbf16, #tpu.memory_space<vmem>>, vector<32x128xbf16>,
      %c0_135 = arith.constant 0 : index
      %c512 = arith.constant 512 : index
      %129 = vector.load %arg6[%c0_135, %c512] : memref<32x640xbf16, #tpu.memory_space<vmem>>, vector<32x128xbf16>
      tpu.vector_store %arg6[%c0_135, %c512], %127 {strides = array<i32>} : memref<32x640xbf16, #tpu.memory_space<vmem>>, vector<32x128xbf16>,
    } else {
    }
    %c0 = arith.constant 0 : index
    %c0_1 = arith.constant 0 : index
    %3 = vector.load %arg4[%c0, %c0_1] : memref<1x384xf32, #tpu.memory_space<vmem>>, vector<1x384xf32>
    %cst = arith.constant 5.000000e-01 : f32
    %4 = vector.broadcast %cst : f32 to vector<1x384xf32>
    %5 = arith.cmpf ogt, %3, %4 : vector<1x384xf32>
    %6 = vector.shape_cast %5 : vector<1x384xi1> to vector<1x384xi1>
    %7 = vector.broadcast %6 : vector<1x384xi1> to vector<16x384xi1>
    %c0_2 = arith.constant 0 : index
    %c0_3 = arith.constant 0 : index
    %c0_4 = arith.constant 0 : index
    %8 = vector.load %arg1[%c0_2, %c0_3, %c0_4] : memref<1x32x384xf32, #tpu.memory_space<vmem>>, vector<1x32x384xf32>
    %9 = vector.shape_cast %8 : vector<1x32x384xf32> to vector<32x384xf32>
    %cst_5 = arith.constant 0.000000e+00 : f32
    %10 = vector.broadcast %cst_5 : f32 to vector<32x384xf32>
    %11 = arith.maximumf %9, %10 : vector<32x384xf32>
    %12 = arith.truncf %11 : vector<32x384xf32> to vector<32x384xbf16>
    %c0_6 = arith.constant 0 : index
    %c128 = arith.constant 128 : index
    %13 = vector.load %arg6[%c0_6, %c128] : memref<32x640xbf16, #tpu.memory_space<vmem>>, vector<32x384xbf16>
    tpu.vector_store %arg6[%c0_6, %c128], %12 {strides = array<i32>} : memref<32x640xbf16, #tpu.memory_space<vmem>>, vector<32x384xbf16>,
    %c0_7 = arith.constant 0 : index
    %c109 = arith.constant 109 : index
    %14 = vector.load %arg6[%c0_7, %c109] : memref<32x640xbf16, #tpu.memory_space<vmem>>, vector<32x384xbf16>
    %c0_8 = arith.constant 0 : index
    %c0_9 = arith.constant 0 : index
    %c0_10 = arith.constant 0 : index
    %c0_11 = arith.constant 0 : index
    %15 = vector.load %arg2[%c0_8, %c0_9, %c0_10, %c0_11] : memref<2x9x16x32xbf16, #tpu.memory_space<vmem>>, vector<1x1x16x32xbf16>
    %16 = vector.shape_cast %15 : vector<1x1x16x32xbf16> to vector<16x32xbf16>
    %cst_12 = arith.constant dense<0.000000e+00> : vector<16x384xf32>
    %17 = tpu.matmul %16, %14, %cst_12 {dimension_numbers = #tpu.dot_dimension_numbers<[1], [0], [0], [1], [0, 0, 1, 1], [], []>} : vector<16x32xbf16>, vector<32x384xbf16>, vector<16x384xf32> -> vector<16x384xf32>
    %c0_13 = arith.constant 0 : index
    %c110 = arith.constant 110 : index
    %18 = vector.load %arg6[%c0_13, %c110] : memref<32x640xbf16, #tpu.memory_space<vmem>>, vector<32x384xbf16>
    %c0_14 = arith.constant 0 : index
    %c1 = arith.constant 1 : index
    %c0_15 = arith.constant 0 : index
    %c0_16 = arith.constant 0 : index
    %19 = vector.load %arg2[%c0_14, %c1, %c0_15, %c0_16] : memref<2x9x16x32xbf16, #tpu.memory_space<vmem>>, vector<1x1x16x32xbf16>
    %20 = vector.shape_cast %19 : vector<1x1x16x32xbf16> to vector<16x32xbf16>
    %cst_17 = arith.constant dense<0.000000e+00> : vector<16x384xf32>
    %21 = tpu.matmul %20, %18, %cst_17 {dimension_numbers = #tpu.dot_dimension_numbers<[1], [0], [0], [1], [0, 0, 1, 1], [], []>} : vector<16x32xbf16>, vector<32x384xbf16>, vector<16x384xf32> -> vector<16x384xf32>
    %22 = arith.addf %17, %21 : vector<16x384xf32>
    %c0_18 = arith.constant 0 : index
    %c111 = arith.constant 111 : index
    %23 = vector.load %arg6[%c0_18, %c111] : memref<32x640xbf16, #tpu.memory_space<vmem>>, vector<32x384xbf16>
    %c0_19 = arith.constant 0 : index
    %c2 = arith.constant 2 : index
    %c0_20 = arith.constant 0 : index
    %c0_21 = arith.constant 0 : index
    %24 = vector.load %arg2[%c0_19, %c2, %c0_20, %c0_21] : memref<2x9x16x32xbf16, #tpu.memory_space<vmem>>, vector<1x1x16x32xbf16>
    %25 = vector.shape_cast %24 : vector<1x1x16x32xbf16> to vector<16x32xbf16>
    %cst_22 = arith.constant dense<0.000000e+00> : vector<16x384xf32>
    %26 = tpu.matmul %25, %23, %cst_22 {dimension_numbers = #tpu.dot_dimension_numbers<[1], [0], [0], [1], [0, 0, 1, 1], [], []>} : vector<16x32xbf16>, vector<32x384xbf16>, vector<16x384xf32> -> vector<16x384xf32>
    %27 = arith.addf %22, %26 : vector<16x384xf32>
    %c0_23 = arith.constant 0 : index
    %c127 = arith.constant 127 : index
    %28 = vector.load %arg6[%c0_23, %c127] : memref<32x640xbf16, #tpu.memory_space<vmem>>, vector<32x384xbf16>
    %c0_24 = arith.constant 0 : index
    %c3 = arith.constant 3 : index
    %c0_25 = arith.constant 0 : index
    %c0_26 = arith.constant 0 : index
    %29 = vector.load %arg2[%c0_24, %c3, %c0_25, %c0_26] : memref<2x9x16x32xbf16, #tpu.memory_space<vmem>>, vector<1x1x16x32xbf16>
    %30 = vector.shape_cast %29 : vector<1x1x16x32xbf16> to vector<16x32xbf16>
    %cst_27 = arith.constant dense<0.000000e+00> : vector<16x384xf32>
    %31 = tpu.matmul %30, %28, %cst_27 {dimension_numbers = #tpu.dot_dimension_numbers<[1], [0], [0], [1], [0, 0, 1, 1], [], []>} : vector<16x32xbf16>, vector<32x384xbf16>, vector<16x384xf32> -> vector<16x384xf32>
    %32 = arith.addf %27, %31 : vector<16x384xf32>
    %c0_28 = arith.constant 0 : index
    %c4 = arith.constant 4 : index
    %c0_29 = arith.constant 0 : index
    %c0_30 = arith.constant 0 : index
    %33 = vector.load %arg2[%c0_28, %c4, %c0_29, %c0_30] : memref<2x9x16x32xbf16, #tpu.memory_space<vmem>>, vector<1x1x16x32xbf16>
    %34 = vector.shape_cast %33 : vector<1x1x16x32xbf16> to vector<16x32xbf16>
    %cst_31 = arith.constant dense<0.000000e+00> : vector<16x384xf32>
    %35 = tpu.matmul %34, %12, %cst_31 {dimension_numbers = #tpu.dot_dimension_numbers<[1], [0], [0], [1], [0, 0, 1, 1], [], []>} : vector<16x32xbf16>, vector<32x384xbf16>, vector<16x384xf32> -> vector<16x384xf32>
    %36 = arith.addf %32, %35 : vector<16x384xf32>
    %c0_32 = arith.constant 0 : index
    %c129 = arith.constant 129 : index
    %37 = vector.load %arg6[%c0_32, %c129] : memref<32x640xbf16, #tpu.memory_space<vmem>>, vector<32x384xbf16>
    %c0_33 = arith.constant 0 : index
    %c5 = arith.constant 5 : index
    %c0_34 = arith.constant 0 : index
    %c0_35 = arith.constant 0 : index
    %38 = vector.load %arg2[%c0_33, %c5, %c0_34, %c0_35] : memref<2x9x16x32xbf16, #tpu.memory_space<vmem>>, vector<1x1x16x32xbf16>
    %39 = vector.shape_cast %38 : vector<1x1x16x32xbf16> to vector<16x32xbf16>
    %cst_36 = arith.constant dense<0.000000e+00> : vector<16x384xf32>
    %40 = tpu.matmul %39, %37, %cst_36 {dimension_numbers = #tpu.dot_dimension_numbers<[1], [0], [0], [1], [0, 0, 1, 1], [], []>} : vector<16x32xbf16>, vector<32x384xbf16>, vector<16x384xf32> -> vector<16x384xf32>
    %41 = arith.addf %36, %40 : vector<16x384xf32>
    %c0_37 = arith.constant 0 : index
    %c145 = arith.constant 145 : index
    %42 = vector.load %arg6[%c0_37, %c145] : memref<32x640xbf16, #tpu.memory_space<vmem>>, vector<32x384xbf16>
    %c0_38 = arith.constant 0 : index
    %c6 = arith.constant 6 : index
    %c0_39 = arith.constant 0 : index
    %c0_40 = arith.constant 0 : index
    %43 = vector.load %arg2[%c0_38, %c6, %c0_39, %c0_40] : memref<2x9x16x32xbf16, #tpu.memory_space<vmem>>, vector<1x1x16x32xbf16>
    %44 = vector.shape_cast %43 : vector<1x1x16x32xbf16> to vector<16x32xbf16>
    %cst_41 = arith.constant dense<0.000000e+00> : vector<16x384xf32>
    %45 = tpu.matmul %44, %42, %cst_41 {dimension_numbers = #tpu.dot_dimension_numbers<[1], [0], [0], [1], [0, 0, 1, 1], [], []>} : vector<16x32xbf16>, vector<32x384xbf16>, vector<16x384xf32> -> vector<16x384xf32>
    %46 = arith.addf %41, %45 : vector<16x384xf32>
    %c0_42 = arith.constant 0 : index
    %c146 = arith.constant 146 : index
    %47 = vector.load %arg6[%c0_42, %c146] : memref<32x640xbf16, #tpu.memory_space<vmem>>, vector<32x384xbf16>
    %c0_43 = arith.constant 0 : index
    %c7 = arith.constant 7 : index
    %c0_44 = arith.constant 0 : index
    %c0_45 = arith.constant 0 : index
    %48 = vector.load %arg2[%c0_43, %c7, %c0_44, %c0_45] : memref<2x9x16x32xbf16, #tpu.memory_space<vmem>>, vector<1x1x16x32xbf16>
    %49 = vector.shape_cast %48 : vector<1x1x16x32xbf16> to vector<16x32xbf16>
    %cst_46 = arith.constant dense<0.000000e+00> : vector<16x384xf32>
    %50 = tpu.matmul %49, %47, %cst_46 {dimension_numbers = #tpu.dot_dimension_numbers<[1], [0], [0], [1], [0, 0, 1, 1], [], []>} : vector<16x32xbf16>, vector<32x384xbf16>, vector<16x384xf32> -> vector<16x384xf32>
    %51 = arith.addf %46, %50 : vector<16x384xf32>
    %c0_47 = arith.constant 0 : index
    %c147 = arith.constant 147 : index
    %52 = vector.load %arg6[%c0_47, %c147] : memref<32x640xbf16, #tpu.memory_space<vmem>>, vector<32x384xbf16>
    %c0_48 = arith.constant 0 : index
    %c8 = arith.constant 8 : index
    %c0_49 = arith.constant 0 : index
    %c0_50 = arith.constant 0 : index
    %53 = vector.load %arg2[%c0_48, %c8, %c0_49, %c0_50] : memref<2x9x16x32xbf16, #tpu.memory_space<vmem>>, vector<1x1x16x32xbf16>
    %54 = vector.shape_cast %53 : vector<1x1x16x32xbf16> to vector<16x32xbf16>
    %cst_51 = arith.constant dense<0.000000e+00> : vector<16x384xf32>
    %55 = tpu.matmul %54, %52, %cst_51 {dimension_numbers = #tpu.dot_dimension_numbers<[1], [0], [0], [1], [0, 0, 1, 1], [], []>} : vector<16x32xbf16>, vector<32x384xbf16>, vector<16x384xf32> -> vector<16x384xf32>
    %56 = arith.addf %51, %55 : vector<16x384xf32>
    %cst_52 = arith.constant 0.000000e+00 : f32
    %57 = vector.broadcast %cst_52 : f32 to vector<16x384xf32>
    %58 = arith.maximumf %56, %57 : vector<16x384xf32>
    %cst_53 = arith.constant 0.000000e+00 : f32
    %59 = vector.broadcast %cst_53 : f32 to vector<16x384xf32>
    %60 = arith.select %7, %58, %59 : vector<16x384xi1>, vector<16x384xf32>
    %c0_54 = arith.constant 0 : index
    %c0_55 = arith.constant 0 : index
    %c0_56 = arith.constant 0 : index
    %61 = vector.load %arg3[%c0_54, %c0_55, %c0_56] : memref<2x32x16xbf16, #tpu.memory_space<vmem>>, vector<1x32x16xbf16>
    %62 = vector.shape_cast %61 : vector<1x32x16xbf16> to vector<32x16xbf16>
    %63 = arith.truncf %60 : vector<16x384xf32> to vector<16x384xbf16>
    %cst_57 = arith.constant dense<0.000000e+00> : vector<32x384xf32>
    %64 = tpu.matmul %62, %63, %cst_57 {dimension_numbers = #tpu.dot_dimension_numbers<[1], [0], [0], [1], [0, 0, 1, 1], [], []>} : vector<32x16xbf16>, vector<16x384xbf16>, vector<32x384xf32> -> vector<32x384xf32>
    %65 = arith.addf %9, %64 : vector<32x384xf32>
    %cst_58 = arith.constant 0.000000e+00 : f32
    %66 = vector.broadcast %cst_58 : f32 to vector<32x384xf32>
    %67 = arith.maximumf %65, %66 : vector<32x384xf32>
    %68 = arith.truncf %67 : vector<32x384xf32> to vector<32x384xbf16>
    %c0_59 = arith.constant 0 : index
    %c128_60 = arith.constant 128 : index
    %69 = vector.load %arg6[%c0_59, %c128_60] : memref<32x640xbf16, #tpu.memory_space<vmem>>, vector<32x384xbf16>
    tpu.vector_store %arg6[%c0_59, %c128_60], %68 {strides = array<i32>} : memref<32x640xbf16, #tpu.memory_space<vmem>>, vector<32x384xbf16>,
    %c0_61 = arith.constant 0 : index
    %c109_62 = arith.constant 109 : index
    %70 = vector.load %arg6[%c0_61, %c109_62] : memref<32x640xbf16, #tpu.memory_space<vmem>>, vector<32x384xbf16>
    %c1_63 = arith.constant 1 : index
    %c0_64 = arith.constant 0 : index
    %c0_65 = arith.constant 0 : index
    %c0_66 = arith.constant 0 : index
    %71 = vector.load %arg2[%c1_63, %c0_64, %c0_65, %c0_66] : memref<2x9x16x32xbf16, #tpu.memory_space<vmem>>, vector<1x1x16x32xbf16>
    %72 = vector.shape_cast %71 : vector<1x1x16x32xbf16> to vector<16x32xbf16>
    %cst_67 = arith.constant dense<0.000000e+00> : vector<16x384xf32>
    %73 = tpu.matmul %72, %70, %cst_67 {dimension_numbers = #tpu.dot_dimension_numbers<[1], [0], [0], [1], [0, 0, 1, 1], [], []>} : vector<16x32xbf16>, vector<32x384xbf16>, vector<16x384xf32> -> vector<16x384xf32>
    %c0_68 = arith.constant 0 : index
    %c110_69 = arith.constant 110 : index
    %74 = vector.load %arg6[%c0_68, %c110_69] : memref<32x640xbf16, #tpu.memory_space<vmem>>, vector<32x384xbf16>
    %c1_70 = arith.constant 1 : index
    %c1_71 = arith.constant 1 : index
    %c0_72 = arith.constant 0 : index
    %c0_73 = arith.constant 0 : index
    %75 = vector.load %arg2[%c1_70, %c1_71, %c0_72, %c0_73] : memref<2x9x16x32xbf16, #tpu.memory_space<vmem>>, vector<1x1x16x32xbf16>
    %76 = vector.shape_cast %75 : vector<1x1x16x32xbf16> to vector<16x32xbf16>
    %cst_74 = arith.constant dense<0.000000e+00> : vector<16x384xf32>
    %77 = tpu.matmul %76, %74, %cst_74 {dimension_numbers = #tpu.dot_dimension_numbers<[1], [0], [0], [1], [0, 0, 1, 1], [], []>} : vector<16x32xbf16>, vector<32x384xbf16>, vector<16x384xf32> -> vector<16x384xf32>
    %78 = arith.addf %73, %77 : vector<16x384xf32>
    %c0_75 = arith.constant 0 : index
    %c111_76 = arith.constant 111 : index
    %79 = vector.load %arg6[%c0_75, %c111_76] : memref<32x640xbf16, #tpu.memory_space<vmem>>, vector<32x384xbf16>
    %c1_77 = arith.constant 1 : index
    %c2_78 = arith.constant 2 : index
    %c0_79 = arith.constant 0 : index
    %c0_80 = arith.constant 0 : index
    %80 = vector.load %arg2[%c1_77, %c2_78, %c0_79, %c0_80] : memref<2x9x16x32xbf16, #tpu.memory_space<vmem>>, vector<1x1x16x32xbf16>
    %81 = vector.shape_cast %80 : vector<1x1x16x32xbf16> to vector<16x32xbf16>
    %cst_81 = arith.constant dense<0.000000e+00> : vector<16x384xf32>
    %82 = tpu.matmul %81, %79, %cst_81 {dimension_numbers = #tpu.dot_dimension_numbers<[1], [0], [0], [1], [0, 0, 1, 1], [], []>} : vector<16x32xbf16>, vector<32x384xbf16>, vector<16x384xf32> -> vector<16x384xf32>
    %83 = arith.addf %78, %82 : vector<16x384xf32>
    %c0_82 = arith.constant 0 : index
    %c127_83 = arith.constant 127 : index
    %84 = vector.load %arg6[%c0_82, %c127_83] : memref<32x640xbf16, #tpu.memory_space<vmem>>, vector<32x384xbf16>
    %c1_84 = arith.constant 1 : index
    %c3_85 = arith.constant 3 : index
    %c0_86 = arith.constant 0 : index
    %c0_87 = arith.constant 0 : index
    %85 = vector.load %arg2[%c1_84, %c3_85, %c0_86, %c0_87] : memref<2x9x16x32xbf16, #tpu.memory_space<vmem>>, vector<1x1x16x32xbf16>
    %86 = vector.shape_cast %85 : vector<1x1x16x32xbf16> to vector<16x32xbf16>
    %cst_88 = arith.constant dense<0.000000e+00> : vector<16x384xf32>
    %87 = tpu.matmul %86, %84, %cst_88 {dimension_numbers = #tpu.dot_dimension_numbers<[1], [0], [0], [1], [0, 0, 1, 1], [], []>} : vector<16x32xbf16>, vector<32x384xbf16>, vector<16x384xf32> -> vector<16x384xf32>
    %88 = arith.addf %83, %87 : vector<16x384xf32>
    %c1_89 = arith.constant 1 : index
    %c4_90 = arith.constant 4 : index
    %c0_91 = arith.constant 0 : index
    %c0_92 = arith.constant 0 : index
    %89 = vector.load %arg2[%c1_89, %c4_90, %c0_91, %c0_92] : memref<2x9x16x32xbf16, #tpu.memory_space<vmem>>, vector<1x1x16x32xbf16>
    %90 = vector.shape_cast %89 : vector<1x1x16x32xbf16> to vector<16x32xbf16>
    %cst_93 = arith.constant dense<0.000000e+00> : vector<16x384xf32>
    %91 = tpu.matmul %90, %68, %cst_93 {dimension_numbers = #tpu.dot_dimension_numbers<[1], [0], [0], [1], [0, 0, 1, 1], [], []>} : vector<16x32xbf16>, vector<32x384xbf16>, vector<16x384xf32> -> vector<16x384xf32>
    %92 = arith.addf %88, %91 : vector<16x384xf32>
    %c0_94 = arith.constant 0 : index
    %c129_95 = arith.constant 129 : index
    %93 = vector.load %arg6[%c0_94, %c129_95] : memref<32x640xbf16, #tpu.memory_space<vmem>>, vector<32x384xbf16>
    %c1_96 = arith.constant 1 : index
    %c5_97 = arith.constant 5 : index
    %c0_98 = arith.constant 0 : index
    %c0_99 = arith.constant 0 : index
    %94 = vector.load %arg2[%c1_96, %c5_97, %c0_98, %c0_99] : memref<2x9x16x32xbf16, #tpu.memory_space<vmem>>, vector<1x1x16x32xbf16>
    %95 = vector.shape_cast %94 : vector<1x1x16x32xbf16> to vector<16x32xbf16>
    %cst_100 = arith.constant dense<0.000000e+00> : vector<16x384xf32>
    %96 = tpu.matmul %95, %93, %cst_100 {dimension_numbers = #tpu.dot_dimension_numbers<[1], [0], [0], [1], [0, 0, 1, 1], [], []>} : vector<16x32xbf16>, vector<32x384xbf16>, vector<16x384xf32> -> vector<16x384xf32>
    %97 = arith.addf %92, %96 : vector<16x384xf32>
    %c0_101 = arith.constant 0 : index
    %c145_102 = arith.constant 145 : index
    %98 = vector.load %arg6[%c0_101, %c145_102] : memref<32x640xbf16, #tpu.memory_space<vmem>>, vector<32x384xbf16>
    %c1_103 = arith.constant 1 : index
    %c6_104 = arith.constant 6 : index
    %c0_105 = arith.constant 0 : index
    %c0_106 = arith.constant 0 : index
    %99 = vector.load %arg2[%c1_103, %c6_104, %c0_105, %c0_106] : memref<2x9x16x32xbf16, #tpu.memory_space<vmem>>, vector<1x1x16x32xbf16>
    %100 = vector.shape_cast %99 : vector<1x1x16x32xbf16> to vector<16x32xbf16>
    %cst_107 = arith.constant dense<0.000000e+00> : vector<16x384xf32>
    %101 = tpu.matmul %100, %98, %cst_107 {dimension_numbers = #tpu.dot_dimension_numbers<[1], [0], [0], [1], [0, 0, 1, 1], [], []>} : vector<16x32xbf16>, vector<32x384xbf16>, vector<16x384xf32> -> vector<16x384xf32>
    %102 = arith.addf %97, %101 : vector<16x384xf32>
    %c0_108 = arith.constant 0 : index
    %c146_109 = arith.constant 146 : index
    %103 = vector.load %arg6[%c0_108, %c146_109] : memref<32x640xbf16, #tpu.memory_space<vmem>>, vector<32x384xbf16>
    %c1_110 = arith.constant 1 : index
    %c7_111 = arith.constant 7 : index
    %c0_112 = arith.constant 0 : index
    %c0_113 = arith.constant 0 : index
    %104 = vector.load %arg2[%c1_110, %c7_111, %c0_112, %c0_113] : memref<2x9x16x32xbf16, #tpu.memory_space<vmem>>, vector<1x1x16x32xbf16>
    %105 = vector.shape_cast %104 : vector<1x1x16x32xbf16> to vector<16x32xbf16>
    %cst_114 = arith.constant dense<0.000000e+00> : vector<16x384xf32>
    %106 = tpu.matmul %105, %103, %cst_114 {dimension_numbers = #tpu.dot_dimension_numbers<[1], [0], [0], [1], [0, 0, 1, 1], [], []>} : vector<16x32xbf16>, vector<32x384xbf16>, vector<16x384xf32> -> vector<16x384xf32>
    %107 = arith.addf %102, %106 : vector<16x384xf32>
    %c0_115 = arith.constant 0 : index
    %c147_116 = arith.constant 147 : index
    %108 = vector.load %arg6[%c0_115, %c147_116] : memref<32x640xbf16, #tpu.memory_space<vmem>>, vector<32x384xbf16>
    %c1_117 = arith.constant 1 : index
    %c8_118 = arith.constant 8 : index
    %c0_119 = arith.constant 0 : index
    %c0_120 = arith.constant 0 : index
    %109 = vector.load %arg2[%c1_117, %c8_118, %c0_119, %c0_120] : memref<2x9x16x32xbf16, #tpu.memory_space<vmem>>, vector<1x1x16x32xbf16>
    %110 = vector.shape_cast %109 : vector<1x1x16x32xbf16> to vector<16x32xbf16>
    %cst_121 = arith.constant dense<0.000000e+00> : vector<16x384xf32>
    %111 = tpu.matmul %110, %108, %cst_121 {dimension_numbers = #tpu.dot_dimension_numbers<[1], [0], [0], [1], [0, 0, 1, 1], [], []>} : vector<16x32xbf16>, vector<32x384xbf16>, vector<16x384xf32> -> vector<16x384xf32>
    %112 = arith.addf %107, %111 : vector<16x384xf32>
    %cst_122 = arith.constant 0.000000e+00 : f32
    %113 = vector.broadcast %cst_122 : f32 to vector<16x384xf32>
    %114 = arith.maximumf %112, %113 : vector<16x384xf32>
    %cst_123 = arith.constant 0.000000e+00 : f32
    %115 = vector.broadcast %cst_123 : f32 to vector<16x384xf32>
    %116 = arith.select %7, %114, %115 : vector<16x384xi1>, vector<16x384xf32>
    %c1_124 = arith.constant 1 : index
    %c0_125 = arith.constant 0 : index
    %c0_126 = arith.constant 0 : index
    %117 = vector.load %arg3[%c1_124, %c0_125, %c0_126] : memref<2x32x16xbf16, #tpu.memory_space<vmem>>, vector<1x32x16xbf16>
    %118 = vector.shape_cast %117 : vector<1x32x16xbf16> to vector<32x16xbf16>
    %119 = arith.truncf %116 : vector<16x384xf32> to vector<16x384xbf16>
    %cst_127 = arith.constant dense<0.000000e+00> : vector<32x384xf32>
    %120 = tpu.matmul %118, %119, %cst_127 {dimension_numbers = #tpu.dot_dimension_numbers<[1], [0], [0], [1], [0, 0, 1, 1], [], []>} : vector<32x16xbf16>, vector<16x384xbf16>, vector<32x384xf32> -> vector<32x384xf32>
    %121 = arith.addf %65, %120 : vector<32x384xf32>
    %cst_128 = arith.constant 0.000000e+00 : f32
    %122 = vector.broadcast %cst_128 : f32 to vector<32x384xf32>
    %123 = arith.maximumf %121, %122 : vector<32x384xf32>
    %c0_129 = arith.constant 0 : index
    %c0_130 = arith.constant 0 : index
    %c0_131 = arith.constant 0 : index
    %124 = vector.load %arg5[%c0_129, %c0_130, %c0_131] : memref<1x32x384xf32, #tpu.memory_space<vmem>>, vector<1x32x384xf32>
    %125 = vector.shape_cast %124 : vector<1x32x384xf32> to vector<32x384xf32>
    %126 = vector.shape_cast %123 : vector<32x384xf32> to vector<1x32x384xf32>
    tpu.vector_store %arg5[%c0_129, %c0_130, %c0_131], %126 {strides = array<i32>} : memref<1x32x384xf32, #tpu.memory_space<vmem>>, vector<1x32x384xf32>,
    return
  }
  func.func @transform_0(%arg0: i32) -> (i32, i32, i32) {
    %c0_i32 = arith.constant 0 : i32
    %c0_i32_0 = arith.constant 0 : i32
    %c0_i32_1 = arith.constant 0 : i32
    return %arg0, %c0_i32, %c0_i32_0 : i32, i32, i32
  }
  func.func @transform_1(%arg0: i32) -> (i32, i32, i32, i32) {
    %c0_i32 = arith.constant 0 : i32
    %c0_i32_0 = arith.constant 0 : i32
    %c0_i32_1 = arith.constant 0 : i32
    %c0_i32_2 = arith.constant 0 : i32
    %c0_i32_3 = arith.constant 0 : i32
    return %c0_i32, %c0_i32_0, %c0_i32_1, %c0_i32_2 : i32, i32, i32, i32
  }
  func.func @transform_2(%arg0: i32) -> (i32, i32, i32) {
    %c0_i32 = arith.constant 0 : i32
    %c0_i32_0 = arith.constant 0 : i32
    %c0_i32_1 = arith.constant 0 : i32
    %c0_i32_2 = arith.constant 0 : i32
    return %c0_i32, %c0_i32_0, %c0_i32_1 : i32, i32, i32
  }
  func.func @transform_3(%arg0: i32) -> (i32, i32) {
    %c0_i32 = arith.constant 0 : i32
    %c0_i32_0 = arith.constant 0 : i32
    %c0_i32_1 = arith.constant 0 : i32
    return %c0_i32, %c0_i32_0 : i32, i32
  }
  func.func @transform_4(%arg0: i32) -> (i32, i32, i32) {
    %c0_i32 = arith.constant 0 : i32
    %c0_i32_0 = arith.constant 0 : i32
    %c0_i32_1 = arith.constant 0 : i32
    return %arg0, %c0_i32, %c0_i32_0 : i32, i32, i32
  }
}

</mosaic_0001>

<bundles_post_ra>
// kernel: resnet_stack_forward.1
= control target key start
LH: loop header
LB: loop body
LE: loop exit
PB: predicated region body
PF: predicated region fallthrough
CT: control target
= control target key end

     0   :  { %s3543_s15 = smov 0   ;;  %s4323_s0 = inlined_call_operand.vmem [shape: f32[2,32,384], index: 0, kind: input, shape index: {}]   ;;  %s4324_s1 = inlined_call_operand.vmem [shape: bf16[2,9,16,32], index: 1, kind: input, shape index: {}]   ;;  %s4325_s2 = inlined_call_operand.vmem [shape: bf16[2,32,16], index: 2, kind: input, shape index: {}]   ;;  %s4326_s3 = inlined_call_operand.vmem [shape: f32[1,384], index: 3, kind: input, shape index: {}]   ;;  %s4327_s4 = inlined_call_operand.vmem [shape: f32[2,32,384], index: 4, kind: output, shape index: {}]  }
   0x1 LB: > { %s2978_s16 = sadd.s32 4294967295, %s3504_s15   ;;  %p2982_p0 = scmp.ge.s32.totalorder %s3504_s15, 1  ;;  %s3504_s15 = sphi %s3543_s15, %s14_s15  }
   0x2   : > { %p162_p1 = scmp.lt.s32.totalorder %s3504_s15, 3 }
   0x4   : > { %p163_p2 = pnand %p2982_p0, %p162_p1 }
   0x5   : > { %p188_p3 = scmp.lt.s32.totalorder (!%p163_p2), %s2978_s16, 1  ;;  %p2985_p4 = scmp.ne.s32.totalorder (!%p163_p2), %s2978_s16, 0 }
   0x6   : > { %166 = sbr.rel (%p163_p2) target bundleno = 1403 (0x57b), region = 36 }
   0xd   : > { %s189_s17 = scalar_select %p188_p3, %s2978_s16, 1 }
   0xe   : > { %202 = sbr.rel (%p2985_p4) target bundleno = 21 (0x15), region = 40  ;;  %v3506_v0 = vmov (!%p2985_p4), 0  }
   0xf   : > { %s3454_s18 = smul.u32 96, %s189_s17  ;;  %203 = vst [vmem:[#allocation2] sm:$0xff] (!%p2985_p4), %v3506_v0  ;;  %204 = vst [vmem:[#allocation2 + $0x28] sm:$0xff] (!%p2985_p4), %v3506_v0 }
  0x10   : > { %205 = vst [vmem:[#allocation2 + $0x20] sm:$0xff] (!%p2985_p4), %v3506_v0  ;;  %206 = vst [vmem:[#allocation2 + $0x48] sm:$0xff] (!%p2985_p4), %v3506_v0 }
  0x11   : > { %s3554_s21 = scalar_lea.vmem %s4323_s0, %s3454_s18  ;;  %s3559_s24 = scalar_lea.vmem %s4327_s4, %s3454_s18 }
  0x15 PF: > { %v3566_v3 = vld [vmem:[%s3554_s21 + $0x30] sm:$0xff]  ;;  %s3507_s25 = smov 18   ;;  %v3571_v4 = vld [vmem:[%s3554_s21 + $0x48] sm:$0xff]  ;;  %v3575_v6 = vld [vmem:[%s3554_s21] sm:$0xff]  ;;  %v3508_v27 = vmov 0.0   ;;  %v3509_v31 = vmov 0  }
  0x16   : > { %v3561_v1 = vld [vmem:[#allocation2] sm:$0xff]  ;;  %v3563_v2 = vld [vmem:[#allocation2 + $0x28] sm:$0xff]  ;;  %v243_v5 = vmax.f32 %v3566_v3, 0.0  ;;  %v3578_v7 = vld [vmem:[%s3554_s21 + $0x18] sm:$0xff]  ;;  %v246_v8 = vmax.f32 %v3571_v4, 0.0  ;;  %v237_v9 = vmax.f32 %v3575_v6, 0.0  ;;  %3170 = vmatprep.subr.bf16.mxu1 %v3508_v27  ;;  %352 = vmatprep.mubr.bf16.mxu0 %v3509_v31 }
  0x17   : > { %287 = vrot.lane.b32.xlu1 %v3561_v1, %s3507_s25  ;;  %v240_v10 = vmax.f32 %v3578_v7, 0.0  ;;  %v3584_v11 = vld [vmem:[%s3554_s21 + $0x8] sm:$0xff]  ;;  %v3587_v12 = vld [vmem:[%s3554_s21 + $0x20] sm:$0xff]  ;;  %v3590_v13 = vld [vmem:[%s3554_s21 + $0x10] sm:$0xff]  ;;  %s3510_s26 = smov 19   ;;  %vm3511_vm0 = vmmov 0  }
  0x18   : > { %v238_v14 = vmax.f32 %v3584_v11, 0.0  ;;  %v241_v15 = vmax.f32 %v3587_v12, 0.0  ;;  %v3595_v16 = vld [vmem:[%s3554_s21 + $0x38] sm:$0xff]  ;;  %v3598_v17 = vld [vmem:[%s3554_s21 + $0x50] sm:$0xff]  ;;  %v3604_v19 = vpack.c.bf16 %v246_v8, %v243_v5  ;;  %v3607_v20 = vld [vmem:[%s3554_s21 + $0x28] sm:$0xff]  ;;  %v239_v21 = vmax.f32 %v3590_v13, 0.0  ;;  %3174 = vmatprep.mubr.msk.bf16.mxu1 %vm3511_vm0, %v3508_v27 }
  0x19   : > { %v3600_v18 = vpack.c.bf16 %v240_v10, %v237_v9  ;;  %v244_v22 = vmax.f32 %v3595_v16, 0.0  ;;  %v247_v24 = vmax.f32 %v3598_v17, 0.0  ;;  %v3617_v25 = vld [vmem:[%s3554_s21 + $0x40] sm:$0xff]  ;;  %v3620_v26 = vld [vmem:[%s3554_s21 + $0x58] sm:$0xff]  ;;  %v242_v28 = vmax.f32 %v3607_v20, 0.0  ;;  %s3512_s27 = smov 17  }
  0x1a   : > { %v3613_v23 = vpack.c.bf16 %v241_v15, %v238_v14  ;;  %v245_v29 = vmax.f32 %v3617_v25, 0.0  ;;  %v248_v30 = vmax.f32 %v3620_v26, 0.0  ;;  %s3513_s28 = smov 1   ;;  %s3514_s29 = smov 127   ;;  %v3705_v35 = vld [vmem:[#allocation2 + $0x20] sm:$0xff]  ;;  %v3715_v36 = vld [vmem:[#allocation2 + $0x48] sm:$0xff] }
  0x1b   : > { %295 = vrot.lane.b32.xlu1 %v3563_v2, %s3507_s25  ;;  %289 = vrot.lane.b32.xlu0 %v3600_v18, %s3507_s25  ;;  %v3631_v32 = vpack.c.bf16 %v247_v24, %v244_v22  ;;  %v3635_v33 = vpack.c.bf16 %v242_v28, %v239_v21  ;;  %s3515_s30 = smov 111   ;;  %s3516_s5 = smov 110   ;;  %vm303_vm1 = vcmask 146432   ;;  %vm425_vm2 = vcmask 154624   ;;  %v3475_v49 = vld [vmem:[%s4324_s1 + $0x8] sm:$0xff]   ;;  %v3476_v63 = vld [vmem:[%s4324_s1] sm:$0xff]  }
  0x1c   : > { %v3645_v34 = vpack.c.bf16 %v248_v30, %v245_v29  ;;  %s3517_s6 = smov 109   ;;  %vm316_vm3 = vcmask 261120   ;;  %vm549_vm4 = vcmask 138240   ;;  %vm679_vm5 = vcmask 7168  }
  0x1d   : > { %vm926_vm6 = vcmask 1039360   ;;  %vm1056_vm7 = vcmask 908288   ;;  %vm1186_vm8 = vcmask 900096   ;;  %vm1316_vm9 = vcmask 891904  }
  0x1e   : > { %vm1451_vm10 = vcmask 130048  }
  0x1f   : > { %297 = vrot.lane.b32.xlu1 %v3604_v19, %s3507_s25  ;;  %291 = vrot.lane.b32.xlu0 %v3613_v23, %s3507_s25 }
  0x23   : > { %413 = vrot.lane.b32.xlu1 %v3613_v23, %s3510_s26  ;;  %299 = vrot.lane.b32.xlu0 %v3631_v32, %s3507_s25 }
  0x27   : > { %293 = vrot.lane.b32.xlu1 %v3635_v33, %s3507_s25  ;;  %411 = vrot.lane.b32.xlu0 %v3600_v18, %s3510_s26 }
  0x2b   : > { %421 = vrot.lane.b32.xlu1 %v3631_v32, %s3510_s26  ;;  %409 = vrot.lane.b32.xlu0 %v3561_v1, %s3510_s26 }
  0x2f   : > { %301 = vrot.lane.b32.xlu1 %v3645_v34, %s3507_s25  ;;  %419 = vrot.lane.b32.xlu0 %v3604_v19, %s3510_s26 }
  0x33   : > { %537 = vrot.lane.b32.xlu1 %v3613_v23, %s3512_s27  ;;  %417 = vrot.lane.b32.xlu0 %v3563_v2, %s3510_s26 }
  0x37   : > { %415 = vrot.lane.b32.xlu1 %v3635_v33, %s3510_s26  ;;  %535 = vrot.lane.b32.xlu0 %v3600_v18, %s3512_s27 }
  0x3b   : > { %545 = vrot.lane.b32.xlu1 %v3631_v32, %s3512_s27  ;;  %533 = vrot.lane.b32.xlu0 %v3561_v1, %s3512_s27 }
  0x3f   : > { %423 = vrot.lane.b32.xlu1 %v3645_v34, %s3510_s26  ;;  %543 = vrot.lane.b32.xlu0 %v3604_v19, %s3512_s27 }
  0x43   : > { %667 = vrot.lane.b32.xlu1 %v3613_v23, %s3513_s28  ;;  %541 = vrot.lane.b32.xlu0 %v3563_v2, %s3512_s27 }
  0x47   : > { %539 = vrot.lane.b32.xlu1 %v3635_v33, %s3512_s27  ;;  %665 = vrot.lane.b32.xlu0 %v3600_v18, %s3513_s28 }
  0x4b   : > { %675 = vrot.lane.b32.xlu1 %v3631_v32, %s3513_s28  ;;  %663 = vrot.lane.b32.xlu0 %v3561_v1, %s3513_s28 }
  0x4f   : > { %547 = vrot.lane.b32.xlu1 %v3645_v34, %s3512_s27  ;;  %673 = vrot.lane.b32.xlu0 %v3604_v19, %s3513_s28 }
  0x53   : > { %677 = vrot.lane.b32.xlu1 %v3645_v34, %s3513_s28  ;;  %671 = vrot.lane.b32.xlu0 %v3563_v2, %s3513_s28 }
  0x57   : > { %914 = vrot.lane.b32.xlu1 %v3635_v33, %s3514_s29  ;;  %669 = vrot.lane.b32.xlu0 %v3635_v33, %s3513_s28 }
  0x5b   : > { %920 = vrot.lane.b32.xlu1 %v3631_v32, %s3514_s29  ;;  %912 = vrot.lane.b32.xlu0 %v3613_v23, %s3514_s29 }
  0x5f   : > { %918 = vrot.lane.b32.xlu1 %v3604_v19, %s3514_s29  ;;  %910 = vrot.lane.b32.xlu0 %v3600_v18, %s3514_s29 }
  0x63   : > { %1044 = vrot.lane.b32.xlu1 %v3635_v33, %s3515_s30  ;;  %922 = vrot.lane.b32.xlu0 %v3645_v34, %s3514_s29 }
  0x67   : > { %916 = vrot.lane.b32.xlu1 %v3705_v35, %s3514_s29  ;;  %1042 = vrot.lane.b32.xlu0 %v3613_v23, %s3515_s30 }
  0x6b   : > { %1052 = vrot.lane.b32.xlu1 %v3645_v34, %s3515_s30  ;;  %1040 = vrot.lane.b32.xlu0 %v3600_v18, %s3515_s30 }
  0x6f   : > { %924 = vrot.lane.b32.xlu1 %v3715_v36, %s3514_s29  ;;  %1050 = vrot.lane.b32.xlu0 %v3631_v32, %s3515_s30 }
  0x73   : > { %1174 = vrot.lane.b32.xlu1 %v3635_v33, %s3516_s5  ;;  %1048 = vrot.lane.b32.xlu0 %v3604_v19, %s3515_s30 }
  0x77   : > { %1046 = vrot.lane.b32.xlu1 %v3705_v35, %s3515_s30  ;;  %1172 = vrot.lane.b32.xlu0 %v3613_v23, %s3516_s5 }
  0x7b   : > { %1182 = vrot.lane.b32.xlu1 %v3645_v34, %s3516_s5  ;;  %1170 = vrot.lane.b32.xlu0 %v3600_v18, %s3516_s5 }
  0x7f   : > { %1054 = vrot.lane.b32.xlu1 %v3715_v36, %s3515_s30  ;;  %1180 = vrot.lane.b32.xlu0 %v3631_v32, %s3516_s5 }
  0x83   : > { %1304 = vrot.lane.b32.xlu1 %v3635_v33, %s3517_s6  ;;  %1178 = vrot.lane.b32.xlu0 %v3604_v19, %s3516_s5 }
  0x87   : > { %1176 = vrot.lane.b32.xlu1 %v3705_v35, %s3516_s5  ;;  %1302 = vrot.lane.b32.xlu0 %v3613_v23, %s3517_s6 }
  0x89   : > { %v288_v37 = vpop.permute.xlu1 %287 }
  0x8b   : > { %1312 = vrot.lane.b32.xlu1 %v3645_v34, %s3517_s6  ;;  %1300 = vrot.lane.b32.xlu0 %v3600_v18, %s3517_s6 }
  0x8d   : > { %v296_v38 = vpop.permute.xlu1 %295  ;;  %v290_v39 = vpop.permute.xlu0 %289 }
  0x8e   : > { %v304_v43 = vsel %vm303_vm1, %v288_v37, %v290_v39 }
  0x8f   : > { %1184 = vrot.lane.b32.xlu1 %v3715_v36, %s3516_s5  ;;  %1310 = vrot.lane.b32.xlu0 %v3631_v32, %s3517_s6 }
  0x91   : > { %v298_v40 = vpop.permute.xlu1 %297  ;;  %v292_v41 = vpop.permute.xlu0 %291 }
  0x92   : > { %v305_v42 = vsel %vm303_vm1, %v290_v39, %v292_v41  ;;  %v307_v47 = vsel %vm303_vm1, %v296_v38, %v298_v40  ;;  %v3477_v38 = vld [vmem:[%s4324_s1 + $0x10] sm:$0xff]  }
  0x93   : > { %1314 = vrot.lane.b32.xlu1 %v3715_v36, %s3517_s6  ;;  %1308 = vrot.lane.b32.xlu0 %v3604_v19, %s3517_s6 }
  0x94   : > { %320 = vmatprep.subr.bf16.mxu0 %v305_v42 }
  0x95   : > { %v414_v44 = vpop.permute.xlu1 %413  ;;  %321 = vmatpush1.bf16.msra.mxu0 %v304_v43  ;;  %v300_v45 = vpop.permute.xlu0 %299 }
  0x96   : > { %v308_v46 = vsel %vm303_vm1, %v298_v40, %v300_v45 }
  0x97   : > { %1631 = vrot.lane.b32.xlu1 %v3563_v2, %s3507_s25  ;;  %1306 = vrot.lane.b32.xlu0 %v3705_v35, %s3517_s6 }
  0x98   : > { %322 = vmatprep.subr.bf16.mxu0 %v308_v46 }
  0x99   : > { %v294_v48 = vpop.permute.xlu1 %293  ;;  %323 = vmatpush1.bf16.msra.mxu0 %v307_v47  ;;  %v412_v51 = vpop.permute.xlu0 %411 }
  0x9a   : > { %v306_v50 = vsel %vm303_vm1, %v292_v41, %v294_v48  ;;  %v427_v52 = vsel %vm425_vm2, %v412_v51, %v414_v44 }
  0x9b   : > { %3171 = vmatpush3.bf16.msra.mxu1 %v306_v50  ;;  %1743 = vrot.lane.b32.xlu1 %v3561_v1, %s3510_s26 }
  0x9c   : > { %441 = vmatprep.subr.bf16.mxu0 %v427_v52  ;;  %3172 = vmatprep.subr.bf16.mxu1 %v3508_v27 }
  0x9d   : > { %v422_v53 = vpop.permute.xlu1 %421  ;;  %2989 = vmatmul.mubr.msk.bf16.vlgmr.msra.gmra.mrb[0].mxu0 %vm316_vm3, %v3475_v49  ;;  %1623 = vrot.lane.b32.xlu0 %v3561_v1, %s3507_s25  ;;  %v410_v54 = vpop.permute.xlu0 %409 }
  0x9e   : > { %473 = vmatprep.mubr.bf16.mxu0 %v3509_v31  ;;  %v426_v55 = vsel %vm425_vm2, %v410_v54, %v412_v51 }
  0x9f   : > { %1751 = vrot.lane.b32.xlu1 %v3563_v2, %s3510_s26  ;;  %442 = vmatpush1.bf16.msra.mxu0 %v426_v55 }
  0xa1   : > { %v302_v56 = vpop.permute.xlu1 %301  ;;  %v420_v58 = vpop.permute.xlu0 %419 }
  0xa2   : > { %v309_v57 = vsel %vm303_vm1, %v300_v45, %v302_v56  ;;  %v430_v59 = vsel %vm425_vm2, %v420_v58, %v422_v53 }
  0xa3   : > { %3173 = vmatpush3.bf16.msra.mxu1 %v309_v57  ;;  %443 = vmatprep.subr.bf16.mxu0 %v430_v59 }
  0xa4   : > { %3178 = vmatprep.subr.bf16.mxu1 %v3508_v27 }
  0xa5   : > { %v538_v60 = vpop.permute.xlu1 %537  ;;  %v418_v61 = vpop.permute.xlu0 %417 }
  0xa6   : > { %3175 = vmatmul.mubr.msk.bf16.vlgmr.msra.gmra.mrb[0].mxu1 %vm316_vm3, %v3475_v49  ;;  %v429_v62 = vsel %vm425_vm2, %v418_v61, %v420_v58 }
  0xa7   : > { %3182 = vmatprep.mubr.msk.bf16.mxu1 %vm3511_vm0, %v3508_v27  ;;  %444 = vmatpush1.bf16.msra.mxu0 %v429_v62 }
  0xa9   : > { %v416_v0 = vpop.permute.xlu1 %415  ;;  %v536_v8 = vpop.permute.xlu0 %535 }
  0xaa   : > { %v428_v5 = vsel %vm425_vm2, %v414_v44, %v416_v0  ;;  %v551_v9 = vsel %vm549_vm4, %v536_v8, %v538_v60  ;;  %2992 = vmatmul.mubr.msk.bf16.vlgmr.msra.gmra.mrb[0].mxu0 %vm316_vm3, %v3476_v63 }
  0xab   : > { %3179 = vmatpush3.bf16.msra.mxu1 %v428_v5  ;;  %565 = vmatprep.subr.bf16.mxu0 %v551_v9 }
  0xac   : > { %3180 = vmatprep.subr.bf16.mxu1 %v3508_v27  ;;  %597 = vmatprep.mubr.bf16.mxu0 %v3509_v31 }
  0xad   : > { %v546_v10 = vpop.permute.xlu1 %545  ;;  %v534_v14 = vpop.permute.xlu0 %533 }
  0xae   : > { %v550_v15 = vsel %vm549_vm4, %v534_v14, %v536_v8 }
  0xaf   : > { %566 = vmatpush1.bf16.msra.mxu0 %v550_v15 }
  0xb1   : > { %v424_v21 = vpop.permute.xlu1 %423  ;;  %v544_v24 = vpop.permute.xlu0 %543 }
  0xb2   : > { %v431_v22 = vsel %vm425_vm2, %v422_v53, %v424_v21  ;;  %v554_v28 = vsel %vm549_vm4, %v544_v24, %v546_v10  ;;  %v3478_v53 = vld [vmem:[%s4324_s1 + $0x18] sm:$0xff]  }
  0xb3   : > { %3181 = vmatpush3.bf16.msra.mxu1 %v431_v22  ;;  %567 = vmatprep.subr.bf16.mxu0 %v554_v28 }
  0xb4   : > { %3186 = vmatprep.subr.bf16.mxu1 %v3508_v27 }
  0xb5   : > { %v668_v29 = vpop.permute.xlu1 %667  ;;  %v542_v30 = vpop.permute.xlu0 %541 }
  0xb6   : > { %3183 = vmatmul.mubr.msk.bf16.vlgmr.msra.gmra.mrb[0].mxu1 %vm316_vm3, %v3476_v63  ;;  %v553_v37 = vsel %vm549_vm4, %v542_v30, %v544_v24 }
  0xb7   : > { %3190 = vmatprep.mubr.msk.bf16.mxu1 %vm3511_vm0, %v3508_v27  ;;  %568 = vmatpush1.bf16.msra.mxu0 %v553_v37 }
  0xb9   : > { %v540_v39 = vpop.permute.xlu1 %539  ;;  %v666_v41 = vpop.permute.xlu0 %665 }
  0xba   : > { %v552_v40 = vsel %vm549_vm4, %v538_v60, %v540_v39  ;;  %v681_v42 = vsel %vm679_vm5, %v666_v41, %v668_v29  ;;  %2997 = vmatmul.mubr.msk.bf16.vlgmr.msra.gmra.mrb[0].mxu0 %vm316_vm3, %v3477_v38 }
  0xbb   : > { %3187 = vmatpush3.bf16.msra.mxu1 %v552_v40  ;;  %695 = vmatprep.subr.bf16.mxu0 %v681_v42  ;;  %v3481_v42 = vld [vmem:[%s4324_s1 + $0x30] sm:$0xff]  }
  0xbc   : > { %3188 = vmatprep.subr.bf16.mxu1 %v3508_v27  ;;  %727 = vmatprep.mubr.bf16.mxu0 %v3509_v31 }
  0xbd   : > { %v676_v43 = vpop.permute.xlu1 %675  ;;  %v664_v44 = vpop.permute.xlu0 %663 }
  0xbe   : > { %v680_v45 = vsel %vm679_vm5, %v664_v44, %v666_v41 }
  0xbf   : > { %696 = vmatpush1.bf16.msra.mxu0 %v680_v45 }
  0xc1   : > { %v548_v46 = vpop.permute.xlu1 %547  ;;  %v674_v48 = vpop.permute.xlu0 %673 }
  0xc2   : > { %v555_v47 = vsel %vm549_vm4, %v546_v10, %v548_v46  ;;  %v684_v49 = vsel %vm679_vm5, %v674_v48, %v676_v43 }
  0xc3   : > { %3189 = vmatpush3.bf16.msra.mxu1 %v555_v47  ;;  %697 = vmatprep.subr.bf16.mxu0 %v684_v49 }
  0xc4   : > { %3194 = vmatprep.subr.bf16.mxu1 %v3508_v27 }
  0xc5   : > { %v678_v50 = vpop.permute.xlu1 %677  ;;  %v672_v51 = vpop.permute.xlu0 %671 }
  0xc6   : > { %3191 = vmatmul.mubr.msk.bf16.vlgmr.msra.gmra.mrb[0].mxu1 %vm316_vm3, %v3477_v38  ;;  %v683_v52 = vsel %vm679_vm5, %v672_v51, %v674_v48  ;;  %v685_v59 = vsel %vm679_vm5, %v676_v43, %v678_v50 }
  0xc7   : > { %3198 = vmatprep.mubr.msk.bf16.mxu1 %vm3511_vm0, %v3508_v27  ;;  %698 = vmatpush1.bf16.msra.mxu0 %v683_v52 }
  0xc8   : > { %796 = vmatprep.subr.bf16.mxu0 %v3613_v23 }
  0xc9   : > { %v915_v54 = vpop.permute.xlu1 %914  ;;  %v670_v55 = vpop.permute.xlu0 %669 }
  0xca   : > { %v682_v56 = vsel %vm679_vm5, %v668_v29, %v670_v55  ;;  %3002 = vmatmul.mubr.msk.bf16.vlgmr.msra.gmra.mrb[0].mxu0 %vm316_vm3, %v3478_v53 }
  0xcb   : > { %3195 = vmatpush3.bf16.msra.mxu1 %v682_v56  ;;  %797 = vmatpush1.bf16.msra.mxu0 %v3600_v18 }
  0xcc   : > { %3196 = vmatprep.subr.bf16.mxu1 %v3508_v27  ;;  %798 = vmatprep.subr.bf16.mxu0 %v3631_v32  ;;  %v3479_v32 = vld [vmem:[%s4324_s1 + $0x20] sm:$0xff]  }
  0xcd   : > { %v921_v57 = vpop.permute.xlu1 %920  ;;  %v913_v58 = vpop.permute.xlu0 %912  ;;  %828 = vmatprep.mubr.bf16.mxu0 %v3509_v31 }
  0xce   : > { %v928_v23 = vsel %vm926_vm6, %v913_v58, %v915_v54 }
  0xcf   : > { %3197 = vmatpush3.bf16.msra.mxu1 %v685_v59  ;;  %799 = vmatpush1.bf16.msra.mxu0 %v3604_v19 }
  0xd0   : > { %942 = vmatprep.subr.bf16.mxu0 %v928_v23  ;;  %3202 = vmatprep.subr.bf16.mxu1 %v3508_v27 }
  0xd1   : > { %v919_v60 = vpop.permute.xlu1 %918  ;;  %v911_v18 = vpop.permute.xlu0 %910 }
  0xd2   : > { %3199 = vmatmul.mubr.msk.bf16.vlgmr.msra.gmra.mrb[0].mxu1 %vm316_vm3, %v3478_v53  ;;  %v927_v62 = vsel %vm926_vm6, %v911_v18, %v913_v58  ;;  %v930_v5 = vsel %vm926_vm6, %v919_v60, %v921_v57  ;;  %v3482_v53 = vld [vmem:[%s4324_s1 + $0x38] sm:$0xff]  }
  0xd3   : > { %3203 = vmatpush3.bf16.msra.mxu1 %v3635_v33  ;;  %3206 = vmatprep.mubr.msk.bf16.mxu1 %vm3511_vm0, %v3508_v27 }
  0xd4   : > { %3204 = vmatprep.subr.bf16.mxu1 %v3508_v27 }
  0xd5   : > { %v1045_v61 = vpop.permute.xlu1 %1044  ;;  %v923_v19 = vpop.permute.xlu0 %922 }
  0xd6   : > { %3007 = vmatmul.mubr.msk.bf16.vlgmr.msra.gmra.mrb[0].mxu0 %vm316_vm3, %v3479_v32  ;;  %v931_v63 = vsel %vm926_vm6, %v921_v57, %v923_v19 }
  0xd7   : > { %943 = vmatpush1.bf16.msra.mxu0 %v927_v62  ;;  %3205 = vmatpush3.bf16.msra.mxu1 %v3645_v34  ;;  %v3480_v34 = vld [vmem:[%s4324_s1 + $0x28] sm:$0xff]  }
  0xd8   : > { %944 = vmatprep.subr.bf16.mxu0 %v931_v63  ;;  %3210 = vmatprep.subr.bf16.mxu1 %v3508_v27  ;;  %v3483_v63 = vld [vmem:[%s4324_s1 + $0x40] sm:$0xff]  }
  0xd9   : > { %v917_v0 = vpop.permute.xlu1 %916  ;;  %v1043_v33 = vpop.permute.xlu0 %1042  ;;  %974 = vmatprep.mubr.bf16.mxu0 %v3509_v31 }
  0xda   : > { %v1058_v8 = vsel %vm1056_vm7, %v1043_v33, %v1045_v61  ;;  %v929_v14 = vsel %vm926_vm6, %v915_v54, %v917_v0 }
  0xdb   : > { %945 = vmatpush1.bf16.msra.mxu0 %v930_v5 }
  0xdc   : > { %1072 = vmatprep.subr.bf16.mxu0 %v1058_v8 }
  0xdd   : > { %v1053_v9 = vpop.permute.xlu1 %1052  ;;  %v1041_v10 = vpop.permute.xlu0 %1040 }
  0xde   : > { %3207 = vmatmul.mubr.msk.bf16.vlgmr.msra.gmra.mrb[0].mxu1 %vm316_vm3, %v3479_v32  ;;  %v1057_v24 = vsel %vm1056_vm7, %v1041_v10, %v1043_v33  ;;  %v210_v10 = vlaneseq }
  0xdf   : > { %3211 = vmatpush3.bf16.msra.mxu1 %v929_v14  ;;  %3214 = vmatprep.mubr.msk.bf16.mxu1 %vm3511_vm0, %v3508_v27  ;;  %v207_v14 = vld [vmem:[%s4326_s3] sm:$0x7] }
  0xe0   : > { %3212 = vmatprep.subr.bf16.mxu1 %v3508_v27  ;;  %vm208_vm11 = vcmp.gt.f32.partialorder %v207_v14, 0.5 }
  0xe1   : > { %v925_v15 = vpop.permute.xlu1 %924  ;;  %v1051_v22 = vpop.permute.xlu0 %1050 }
  0xe2   : > { %v932_v21 = vsel %vm926_vm6, %v923_v19, %v925_v15  ;;  %3012 = vmatmul.mubr.msk.bf16.vlgmr.msra.gmra.mrb[0].mxu0 %vm316_vm3, %v3480_v34  ;;  %v1061_v28 = vsel %vm1056_vm7, %v1051_v22, %v1053_v9 }
  0xe3   : > { %3213 = vmatpush3.bf16.msra.mxu1 %v932_v21  ;;  %1073 = vmatpush1.bf16.msra.mxu0 %v1057_v24  ;;  %v209_v21 = vsel %vm208_vm11, 1, %v3509_v31 }
  0xe4   : > { %1074 = vmatprep.subr.bf16.mxu0 %v1061_v28  ;;  %3218 = vmatprep.subr.bf16.mxu1 %v3508_v27 }
  0xe5   : > { %v1175_v29 = vpop.permute.xlu1 %1174  ;;  %v1049_v30 = vpop.permute.xlu0 %1048  ;;  %1104 = vmatprep.mubr.bf16.mxu0 %v3509_v31 }
  0xe6   : > { %v1060_v37 = vsel %vm1056_vm7, %v1049_v30, %v1051_v22 }
  0xe7   : > { %1075 = vmatpush1.bf16.msra.mxu0 %v1060_v37 }
  0xe9   : > { %v1047_v38 = vpop.permute.xlu1 %1046  ;;  %v1173_v40 = vpop.permute.xlu0 %1172 }
  0xea   : > { %v1059_v39 = vsel %vm1056_vm7, %v1045_v61, %v1047_v38  ;;  %3215 = vmatmul.mubr.msk.bf16.vlgmr.msra.gmra.mrb[0].mxu1 %vm316_vm3, %v3480_v34  ;;  %v1188_v41 = vsel %vm1186_vm8, %v1173_v40, %v1175_v29  ;;  %v211_v34 = vshrl.u32 %v210_v10, 7 }
  0xeb   : > { %3219 = vmatpush3.bf16.msra.mxu1 %v1059_v39  ;;  %1202 = vmatprep.subr.bf16.mxu0 %v1188_v41 }
  0xec   : > { %3220 = vmatprep.subr.bf16.mxu1 %v3508_v27  ;;  %3222 = vmatprep.mubr.msk.bf16.mxu1 %vm3511_vm0, %v3508_v27  ;;  %v216_v15 = vsub.s32 1, %v211_v34  ;;  %v212_v22 = vsub.s32 0, %v211_v34  ;;  %v220_v37 = vsub.s32 2, %v211_v34 }
  0xed   : > { %v1183_v43 = vpop.permute.xlu1 %1182  ;;  %v1171_v44 = vpop.permute.xlu0 %1170 }
  0xee   : > { %v1187_v45 = vsel %vm1186_vm8, %v1171_v44, %v1173_v40  ;;  %3017 = vmatmul.mubr.msk.bf16.vlgmr.msra.gmra.mrb[0].mxu0 %vm316_vm3, %v3481_v42  ;;  %v217_v24 = vrot.slane %v209_v21, %v216_v15  ;;  %v213_v28 = vrot.slane %v209_v21, %v212_v22 }
  0xef   : > { %1203 = vmatpush1.bf16.msra.mxu0 %v1187_v45  ;;  %1234 = vmatprep.mubr.bf16.mxu0 %v3509_v31  ;;  %v3496_v45 = vld [vmem:[%s4325_s2 + $0x18] sm:$0xff]  }
  0xf0   : > { %vm223_vm12 = vcmp.eq.s32.totalorder %v217_v24, 1  ;;  %vm222_vm13 = vcmp.eq.s32.totalorder %v213_v28, 1 }
  0xf1   : > { %v1055_v46 = vpop.permute.xlu1 %1054  ;;  %v1181_v48 = vpop.permute.xlu0 %1180  ;;  %vm3918_vm14 = vmpackc.low %vm223_vm12, %vm223_vm12 }
  0xf2   : > { %v1062_v47 = vsel %vm1056_vm7, %v1053_v9, %v1055_v46  ;;  %v1191_v49 = vsel %vm1186_vm8, %v1181_v48, %v1183_v43  ;;  %v3484_v9 = vld [vmem:[%s4325_s2] sm:$0xff]   ;;  %v221_v46 = vrot.slane %v209_v21, %v220_v37  ;;  %vm3922_vm15 = vmpackc.low %vm222_vm13, %vm222_vm13 }
  0xf3   : > { %3221 = vmatpush3.bf16.msra.mxu1 %v1062_v47  ;;  %1204 = vmatprep.subr.bf16.mxu0 %v1191_v49 }
  0xf4   : > { %3226 = vmatprep.subr.bf16.mxu1 %v3508_v27  ;;  %vm224_vm11 = vcmp.eq.s32.totalorder %v221_v46, 1 }
  0xf5   : > { %v1305_v50 = vpop.permute.xlu1 %1304  ;;  %v1179_v51 = vpop.permute.xlu0 %1178  ;;  %vm3932_vm12 = vmpackc.low %vm224_vm11, %vm224_vm11 }
  0xf6   : > { %v1190_v52 = vsel %vm1186_vm8, %v1179_v51, %v1181_v48  ;;  %3223 = vmatmul.mubr.msk.bf16.vlgmr.msra.gmra.mrb[0].mxu1 %vm316_vm3, %v3481_v42 }
  0xf7   : > { %1205 = vmatpush1.bf16.msra.mxu0 %v1190_v52  ;;  %3230 = vmatprep.mubr.msk.bf16.mxu1 %vm3511_vm0, %v3508_v27 }
  0xf9   : > { %v1177_v54 = vpop.permute.xlu1 %1176  ;;  %v1303_v56 = vpop.permute.xlu0 %1302 }
  0xfa   : > { %v1189_v55 = vsel %vm1186_vm8, %v1175_v29, %v1177_v54  ;;  %v1318_v57 = vsel %vm1316_vm9, %v1303_v56, %v1305_v50  ;;  %3022 = vmatmul.mubr.msk.bf16.vlgmr.msra.gmra.mrb[0].mxu0 %vm316_vm3, %v3482_v53 }
  0xfb   : > { %3227 = vmatpush3.bf16.msra.mxu1 %v1189_v55  ;;  %1332 = vmatprep.subr.bf16.mxu0 %v1318_v57  ;;  %v3485_v57 = vld [vmem:[%s4325_s2 + $0x8] sm:$0xff]  }
  0xfc   : > { %3228 = vmatprep.subr.bf16.mxu1 %v3508_v27  ;;  %1364 = vmatprep.mubr.bf16.mxu0 %v3509_v31 }
  0xfd   : > { %v1313_v58 = vpop.permute.xlu1 %1312  ;;  %v1301_v59 = vpop.permute.xlu0 %1300 }
  0xfe   : > { %v1317_v23 = vsel %vm1316_vm9, %v1301_v59, %v1303_v56 }
  0xff   : > { %1333 = vmatpush1.bf16.msra.mxu0 %v1317_v23 }
 0x101   : > { %v1185_v60 = vpop.permute.xlu1 %1184  ;;  %v1311_v32 = vpop.permute.xlu0 %1310 }
 0x102   : > { %v1192_v18 = vsel %vm1186_vm8, %v1183_v43, %v1185_v60  ;;  %v1321_v61 = vsel %vm1316_vm9, %v1311_v32, %v1313_v58 }
 0x103   : > { %3229 = vmatpush3.bf16.msra.mxu1 %v1192_v18  ;;  %1334 = vmatprep.subr.bf16.mxu0 %v1321_v61 }
 0x104   : > { %3234 = vmatprep.subr.bf16.mxu1 %v3508_v27 }
 0x105   : > { %v1309_v19 = vpop.permute.xlu0 %1308  ;;  %v1315_v5 = vpop.permute.xlu1 %1314 }
 0x106   : > { %3231 = vmatmul.mubr.msk.bf16.vlgmr.msra.gmra.mrb[0].mxu1 %vm316_vm3, %v3482_v53  ;;  %v1320_v62 = vsel %vm1316_vm9, %v1309_v19, %v1311_v32  ;;  %v1322_v8 = vsel %vm1316_vm9, %v1313_v58, %v1315_v5 }
 0x107   : > { %3238 = vmatprep.mubr.msk.bf16.mxu1 %vm3511_vm0, %v3508_v27  ;;  %1335 = vmatpush1.bf16.msra.mxu0 %v1320_v62 }
 0x109   : > { %v1307_v0 = vpop.permute.xlu0 %1306 }
 0x10a   : > { %v1319_v33 = vsel %vm1316_vm9, %v1305_v50, %v1307_v0  ;;  %3027 = vmatmul.mubr.msk.bf16.vlgmr.msra.gmra.mrb[0].mxu0 %vm316_vm3, %v3483_v63 }
 0x10b   : > { %3235 = vmatpush3.bf16.msra.mxu1 %v1319_v33  ;;  %1490 = vmatprep.mubr.bf16.mxu0 %v3509_v31 }
 0x10c   : > { %3236 = vmatprep.subr.bf16.mxu1 %v3508_v27 }
 0x10f   : > { %3237 = vmatpush3.bf16.msra.mxu1 %v1322_v8  ;;  %v1624_v46 = vpop.permute.xlu0 %1623 }
 0x112   : > { %3239 = vmatmul.mubr.msk.bf16.vlgmr.msra.gmra.mrb[0].mxu1 %vm316_vm3, %v3483_v63 }
 0x113   : > { %3244 = vmatprep.mubr.msk.bf16.mxu1 %vm1451_vm10, %v3484_v9 }
 0x1dd   : > { %v1366_v29 = vpop.f32.mrb[0].mxu0 }
 0x1de   : > { %v1368_v30 = vpop.f32.mrb[1].mxu0  ;;  %v1422_v39 = vmax.f32 %v1366_v29, 0.0 }
 0x1df   : > { %v1370_v38 = vpop.f32.mrb[2].mxu0  ;;  %v1423_v42 = vmax.f32 %v1368_v30, 0.0 }
 0x1e0   : > { %v1425_v40 = vmax.f32 %v1370_v38, 0.0  ;;  %v1372_v41 = vpop.f32.mrb[3].mxu0 }
 0x1e1   : > { %v1426_v43 = vmax.f32 %v1372_v41, 0.0 }
 0x1e2   : > { %v3035_v44 = vpack.c.bf16 %v1425_v40, %v1422_v39 }
 0x1e3   : > { %v3032_v47 = vpack.c.bf16 %v1426_v43, %v1423_v42 }
 0x1e5   : > { %v1409_v49 = vpop.f32.mrb[0].mxu1  ;;  %3033 = vmatprep.subr.msk.bf16.mxu0 %vm3918_vm14, %v3032_v47 }
 0x1e6   : > { %v3240_v50 = vpop.f32.mrb[1].mxu1  ;;  %3036 = vmatpush1.bf16.msk.msra.mxu0 %vm3922_vm15, %v3035_v44  ;;  %v1424_v52 = vmax.f32 %v1409_v49, 0.0 }
 0x1e7   : > { %v1412_v51 = vpop.f32.mrb[2].mxu1  ;;  %3248 = vmatprep.subr.bf16.mxu0 %v3508_v27 }
 0x1e8   : > { %v1427_v53 = vmax.f32 %v1412_v51, 0.0  ;;  %v3241_v54 = vpop.f32.mrb[3].mxu1 }
 0x1e9   : > { %3037 = vmatmul.mubr.msk.bf16.vlgmr.msra.gmra.mrb[4].mxu0 %vm1451_vm10, %v3484_v9 }
 0x1ea   : > { %v3040_v56 = vpack.c.bf16 %v1427_v53, %v1424_v52  ;;  %1500 = vmatprep.mubr.bf16.mxu0 %v3509_v31 }
 0x1ec   : > { %3242 = vmatprep.subr.msk.bf16.mxu1 %vm3932_vm12, %v3040_v56 }
 0x1ed   : > { %3243 = vmatpush3.bf16.msk.msra.mxu1 %vm3932_vm12, %v3040_v56 }
 0x1f0   : > { %3245 = vmatmul.mubr.msk.bf16.vlgmr.msra.gmra.mrb[4].mxu1 %vm1451_vm10, %v3485_v57 }
 0x1f1   : > { %3038 = vmatmul.mubr.msk.bf16.gmra.mrb[8].mxu0 %vm1451_vm10, %v3485_v57  ;;  %1686 = vmatprep.mubr.bf16.mxu1 %v3509_v31 }
 0x1f2   : > { %3252 = vmatprep.mubr.msk.bf16.mxu0 %vm3511_vm0, %v3508_v27 }
 0x2bc   : > { %v1492_v58 = vpop.f32.mrb[4].mxu0 }
 0x2bd   : > { %v3950_v59 = vadd.f32 %v1492_v58, %v3575_v6  ;;  %v1494_v23 = vpop.f32.mrb[5].mxu0 }
 0x2be   : > { %v3953_v60 = vadd.f32 %v1494_v23, %v3584_v11  ;;  %v1496_v18 = vpop.f32.mrb[6].mxu0 }
 0x2bf   : > { %v1572_v32 = vmax.f32 %v3950_v59, 0.0  ;;  %v3957_v61 = vadd.f32 %v1496_v18, %v3578_v7  ;;  %v1498_v19 = vpop.f32.mrb[7].mxu0 }
 0x2c0   : > { %v1573_v62 = vmax.f32 %v3953_v60, 0.0  ;;  %v3961_v63 = vadd.f32 %v1498_v19, %v3587_v12 }
 0x2c1   : > { %v1575_v0 = vmax.f32 %v3957_v61, 0.0 }
 0x2c2   : > { %v1576_v6 = vmax.f32 %v3961_v63, 0.0 }
 0x2c3   : > { %v3965_v33 = vpack.c.bf16 %v1575_v0, %v1572_v32  ;;  %v3246_v11 = vpop.f32.mrb[4].mxu1 }
 0x2c4   : > { %v3967_v5 = vpack.c.bf16 %v1576_v6, %v1573_v62  ;;  %v3970_v8 = vadd.f32 %v3246_v11, %v3617_v25  ;;  %v1502_v7 = vpop.f32.mrb[8].mxu0  ;;  %v1545_v9 = vpop.f32.mrb[5].mxu1  ;;  %v3486_v6 = vld [vmem:[%s4324_s1 + $0x50] sm:$0xff]  }
 0x2c5   : > { %v3973_v10 = vadd.f32 %v1502_v7, %v3566_v3  ;;  %v3976_v12 = vadd.f32 %v1545_v9, %v3590_v13  ;;  %v1504_v14 = vpop.f32.mrb[9].mxu0  ;;  %v3247_v34 = vpop.f32.mrb[6].mxu1  ;;  %1745 = vrot.lane.b32.xlu1 %v3965_v33, %s3510_s26 }
 0x2c6   : > { %v3981_v15 = vadd.f32 %v1504_v14, %v3595_v16  ;;  %v3984_v21 = vadd.f32 %v3247_v34, %v3620_v26  ;;  %v1506_v25 = vpop.f32.mrb[10].mxu0  ;;  %v1548_v22 = vpop.f32.mrb[7].mxu1  ;;  %v1580_v29 = vmax.f32 %v3970_v8, 0.0 }
 0x2c7   : > { %v1578_v24 = vmax.f32 %v3973_v10, 0.0  ;;  %v3988_v3 = vadd.f32 %v1506_v25, %v3571_v4  ;;  %v3991_v13 = vadd.f32 %v1548_v22, %v3607_v20  ;;  %v1508_v28 = vpop.f32.mrb[11].mxu0  ;;  %v1574_v37 = vmax.f32 %v3976_v12, 0.0 }
 0x2c8   : > { %v1579_v30 = vmax.f32 %v3981_v15, 0.0  ;;  %v1583_v16 = vmax.f32 %v3984_v21, 0.0  ;;  %v3997_v26 = vadd.f32 %v1508_v28, %v3598_v17 }
 0x2c9   : > { %v1581_v38 = vmax.f32 %v3988_v3, 0.0  ;;  %v1577_v4 = vmax.f32 %v3991_v13, 0.0  ;;  %1627 = vrot.lane.b32.xlu1 %v3967_v5, %s3507_s25 }
 0x2ca   : > { %v4004_v20 = vpack.c.bf16 %v1583_v16, %v1580_v29  ;;  %v1582_v39 = vmax.f32 %v3997_v26, 0.0 }
 0x2cb   : > { %v4007_v40 = vpack.c.bf16 %v1581_v38, %v1578_v24  ;;  %v4009_v41 = vpack.c.bf16 %v1577_v4, %v1574_v37  ;;  %v3487_v37 = vld [vmem:[%s4324_s1 + $0x48] sm:$0xff]  }
 0x2cc   : > { %1637 = vrot.lane.b32.xlu0 %v4004_v20, %s3507_s25  ;;  %v4013_v17 = vpack.c.bf16 %v1582_v39, %v1579_v30 }
 0x2cd   : > { %1633 = vrot.lane.b32.xlu1 %v4007_v40, %s3507_s25 }
 0x2d0   : > { %1629 = vrot.lane.b32.xlu0 %v4009_v41, %s3507_s25 }
 0x2d1   : > { %1868 = vrot.lane.b32.xlu1 %v3965_v33, %s3512_s27 }
 0x2d4   : > { %1749 = vrot.lane.b32.xlu0 %v4009_v41, %s3510_s26 }
 0x2d5   : > { %1753 = vrot.lane.b32.xlu1 %v4007_v40, %s3510_s26 }
 0x2d8   : > { %1625 = vrot.lane.b32.xlu0 %v3965_v33, %s3507_s25 }
 0x2d9   : > { %1866 = vrot.lane.b32.xlu1 %v3561_v1, %s3512_s27 }
 0x2dc   : > { %1747 = vrot.lane.b32.xlu0 %v3967_v5, %s3510_s26 }
 0x2dd   : > { %1876 = vrot.lane.b32.xlu1 %v4007_v40, %s3512_s27 }
 0x2e0   : > { %1635 = vrot.lane.b32.xlu0 %v4013_v17, %s3507_s25 }
 0x2e1   : > { %1874 = vrot.lane.b32.xlu1 %v3563_v2, %s3512_s27  ;;  %v3497_v2 = vld [vmem:[#allocation2 + $0x28] sm:$0xff] }
 0x2e4   : > { %1870 = vrot.lane.b32.xlu0 %v3967_v5, %s3512_s27 }
 0x2e5   : > { %1997 = vrot.lane.b32.xlu1 %v3965_v33, %s3513_s28 }
 0x2e8   : > { %1757 = vrot.lane.b32.xlu0 %v4004_v20, %s3510_s26 }
 0x2e9   : > { %1995 = vrot.lane.b32.xlu1 %v3561_v1, %s3513_s28  ;;  %v1632_v1 = vpop.permute.xlu1 %1631 }
 0x2ec   : > { %1755 = vrot.lane.b32.xlu0 %v4013_v17, %s3510_s26 }
 0x2ed   : > { %2005 = vrot.lane.b32.xlu1 %v4007_v40, %s3513_s28  ;;  %v1744_v42 = vpop.permute.xlu1 %1743 }
 0x2f0   : > { %1872 = vrot.lane.b32.xlu0 %v4009_v41, %s3512_s27 }
 0x2f1   : > { %2003 = vrot.lane.b32.xlu1 %v3497_v2, %s3513_s28  ;;  %v1752_v43 = vpop.permute.xlu1 %1751 }
 0x2f4   : > { %1999 = vrot.lane.b32.xlu0 %v3967_v5, %s3513_s28 }
 0x2f5   : > { %2009 = vrot.lane.b32.xlu1 %v4004_v20, %s3513_s28 }
 0x2f8   : > { %1878 = vrot.lane.b32.xlu0 %v4013_v17, %s3512_s27 }
 0x2f9   : > { %2245 = vrot.lane.b32.xlu1 %v4009_v41, %s3514_s29 }
 0x2fc   : > { %1880 = vrot.lane.b32.xlu0 %v4004_v20, %s3512_s27 }
 0x2fd   : > { %2249 = vrot.lane.b32.xlu1 %v4007_v40, %s3514_s29 }
 0x300   : > { %2001 = vrot.lane.b32.xlu0 %v4009_v41, %s3513_s28 }
 0x301   : > { %2372 = vrot.lane.b32.xlu1 %v3967_v5, %s3515_s30 }
 0x304   : > { %2007 = vrot.lane.b32.xlu0 %v4013_v17, %s3513_s28 }
 0x305   : > { %2370 = vrot.lane.b32.xlu1 %v3965_v33, %s3515_s30 }
 0x308   : > { %2243 = vrot.lane.b32.xlu0 %v3967_v5, %s3514_s29 }
 0x309   : > { %2251 = vrot.lane.b32.xlu1 %v4013_v17, %s3514_s29 }
 0x30c   : > { %2241 = vrot.lane.b32.xlu0 %v3965_v33, %s3514_s29 }
 0x30d   : > { %2378 = vrot.lane.b32.xlu1 %v4007_v40, %s3515_s30 }
 0x310   : > { %2253 = vrot.lane.b32.xlu0 %v4004_v20, %s3514_s29 }
 0x311   : > { %2501 = vrot.lane.b32.xlu1 %v3967_v5, %s3516_s5 }
 0x314   : > { %2247 = vrot.lane.b32.xlu0 %v3705_v35, %s3514_s29 }
 0x315   : > { %2380 = vrot.lane.b32.xlu1 %v4013_v17, %s3515_s30 }
 0x318   : > { %2374 = vrot.lane.b32.xlu0 %v4009_v41, %s3515_s30 }
 0x319   : > { %2499 = vrot.lane.b32.xlu1 %v3965_v33, %s3516_s5 }
 0x31c   : > { %2255 = vrot.lane.b32.xlu0 %v3715_v36, %s3514_s29 }
 0x31d   : > { %2507 = vrot.lane.b32.xlu1 %v4007_v40, %s3516_s5 }
 0x320   : > { %2382 = vrot.lane.b32.xlu0 %v4004_v20, %s3515_s30 }
 0x321   : > { %2509 = vrot.lane.b32.xlu1 %v4013_v17, %s3516_s5 }
 0x324   : > { %2376 = vrot.lane.b32.xlu0 %v3705_v35, %s3515_s30 }
 0x325   : > { %2630 = vrot.lane.b32.xlu1 %v3967_v5, %s3517_s6 }
 0x328   : > { %2503 = vrot.lane.b32.xlu0 %v4009_v41, %s3516_s5 }
 0x329   : > { %2628 = vrot.lane.b32.xlu1 %v3965_v33, %s3517_s6 }
 0x32c   : > { %2384 = vrot.lane.b32.xlu0 %v3715_v36, %s3515_s30 }
 0x32d   : > { %2638 = vrot.lane.b32.xlu1 %v4013_v17, %s3517_s6 }
 0x330   : > { %2511 = vrot.lane.b32.xlu0 %v4004_v20, %s3516_s5 }
 0x331   : > { %2636 = vrot.lane.b32.xlu1 %v4007_v40, %s3517_s6 }
 0x334   : > { %2505 = vrot.lane.b32.xlu0 %v3705_v35, %s3516_s5 }
 0x335   : > { %2642 = vrot.lane.b32.xlu1 %v3715_v36, %s3517_s6 }
 0x337   : > { %v1746_v44 = vpop.permute.xlu1 %1745 }
 0x338   : > { %2632 = vrot.lane.b32.xlu0 %v4009_v41, %s3517_s6  ;;  %v1759_v25 = vsel %vm425_vm2, %v1744_v42, %v1746_v44 }
 0x33b   : > { %v1628_v47 = vpop.permute.xlu1 %1627 }
 0x33c   : > { %2513 = vrot.lane.b32.xlu0 %v3715_v36, %s3516_s5 }
 0x33e   : > { %v1638_v49 = vpop.permute.xlu0 %1637 }
 0x33f   : > { %v1634_v50 = vpop.permute.xlu1 %1633 }
 0x340   : > { %2640 = vrot.lane.b32.xlu0 %v4004_v20, %s3517_s6  ;;  %v1642_v11 = vsel %vm303_vm1, %v1632_v1, %v1634_v50 }
 0x342   : > { %v1630_v51 = vpop.permute.xlu0 %1629 }
 0x343   : > { %v1641_v52 = vsel %vm303_vm1, %v1628_v47, %v1630_v51  ;;  %v1869_v53 = vpop.permute.xlu1 %1868  ;;  %v3488_v51 = vld [vmem:[%s4324_s1 + $0x58] sm:$0xff]  }
 0x344   : > { %3249 = vmatpush3.bf16.msra.mxu0 %v1641_v52  ;;  %2634 = vrot.lane.b32.xlu0 %v3705_v35, %s3517_s6 }
 0x345   : > { %3250 = vmatprep.subr.bf16.mxu0 %v3508_v27 }
 0x346   : > { %v1750_v54 = vpop.permute.xlu0 %1749 }
 0x347   : > { %v1754_v56 = vpop.permute.xlu1 %1753 }
 0x348   : > { %v1762_v38 = vsel %vm425_vm2, %v1752_v43, %v1754_v56 }
 0x34a   : > { %v1626_v57 = vpop.permute.xlu0 %1625 }
 0x34b   : > { %v1639_v36 = vsel %vm303_vm1, %v1624_v46, %v1626_v57  ;;  %v1867_v58 = vpop.permute.xlu1 %1866  ;;  %v1640_v23 = vsel %vm303_vm1, %v1626_v57, %v1628_v47 }
 0x34c   : > { %1654 = vmatprep.subr.bf16.mxu1 %v1640_v23  ;;  %v1882_v42 = vsel %vm549_vm4, %v1867_v58, %v1869_v53 }
 0x34d   : > { %1655 = vmatpush1.bf16.msra.mxu1 %v1639_v36 }
 0x34e   : > { %v1748_v18 = vpop.permute.xlu0 %1747 }
 0x34f   : > { %v1877_v32 = vpop.permute.xlu1 %1876  ;;  %v1760_v7 = vsel %vm425_vm2, %v1746_v44, %v1748_v18  ;;  %v1761_v14 = vsel %vm425_vm2, %v1748_v18, %v1750_v54 }
 0x352   : > { %v1636_v19 = vpop.permute.xlu0 %1635 }
 0x353   : > { %v1644_v62 = vsel %vm303_vm1, %v1636_v19, %v1638_v49  ;;  %v1875_v0 = vpop.permute.xlu1 %1874  ;;  %v1643_v35 = vsel %vm303_vm1, %v1634_v50, %v1636_v19 }
 0x354   : > { %1656 = vmatprep.subr.bf16.mxu1 %v1643_v35  ;;  %3251 = vmatpush3.bf16.msra.mxu0 %v1644_v62  ;;  %v1885_v50 = vsel %vm549_vm4, %v1875_v0, %v1877_v32  ;;  %v3489_v35 = vld [vmem:[%s4324_s1 + $0x60] sm:$0xff]  }
 0x355   : > { %1657 = vmatpush1.bf16.msra.mxu1 %v1642_v11  ;;  %3256 = vmatprep.subr.bf16.mxu0 %v3508_v27 }
 0x356   : > { %1774 = vmatprep.subr.bf16.mxu1 %v1760_v7  ;;  %v1871_v9 = vpop.permute.xlu0 %1870 }
 0x357   : > { %v1998_v34 = vpop.permute.xlu1 %1997  ;;  %3253 = vmatmul.mubr.msk.bf16.vlgmr.msra.gmra.mrb[12].mxu0 %vm316_vm3, %v3486_v6  ;;  %v1883_v4 = vsel %vm549_vm4, %v1869_v53, %v1871_v9 }
 0x358   : > { %3049 = vmatmul.mubr.msk.bf16.vlgmr.msra.gmra.mrb[8].mxu1 %vm316_vm3, %v3486_v6  ;;  %3257 = vmatpush3.bf16.msra.mxu0 %v1761_v14 }
 0x359   : > { %1775 = vmatpush1.bf16.msra.mxu1 %v1759_v25  ;;  %3258 = vmatprep.subr.bf16.mxu0 %v3508_v27 }
 0x35a   : > { %v1758_v22 = vpop.permute.xlu0 %1757  ;;  %1806 = vmatprep.mubr.bf16.mxu1 %v3509_v31  ;;  %3260 = vmatprep.mubr.msk.bf16.mxu0 %vm3511_vm0, %v3508_v27 }
 0x35b   : > { %v1996_v24 = vpop.permute.xlu1 %1995 }
 0x35c   : > { %v2011_v57 = vsel %vm679_vm5, %v1996_v24, %v1998_v34 }
 0x35e   : > { %v1756_v28 = vpop.permute.xlu0 %1755 }
 0x35f   : > { %v1764_v29 = vsel %vm425_vm2, %v1756_v28, %v1758_v22  ;;  %v2006_v30 = vpop.permute.xlu1 %2005  ;;  %v1763_v16 = vsel %vm425_vm2, %v1754_v56, %v1756_v28 }
 0x360   : > { %1776 = vmatprep.subr.bf16.mxu1 %v1763_v16  ;;  %3259 = vmatpush3.bf16.msra.mxu0 %v1764_v29 }
 0x361   : > { %1777 = vmatpush1.bf16.msra.mxu1 %v1762_v38  ;;  %3264 = vmatprep.subr.bf16.mxu0 %v3508_v27 }
 0x362   : > { %1897 = vmatprep.subr.bf16.mxu1 %v1883_v4  ;;  %v1873_v39 = vpop.permute.xlu0 %1872 }
 0x363   : > { %v1884_v2 = vsel %vm549_vm4, %v1871_v9, %v1873_v39  ;;  %v2004_v1 = vpop.permute.xlu1 %2003  ;;  %3261 = vmatmul.mubr.msk.bf16.vlgmr.msra.gmra.mrb[12].mxu0 %vm316_vm3, %v3487_v37 }
 0x364   : > { %3052 = vmatmul.mubr.msk.bf16.vlgmr.msra.gmra.mrb[8].mxu1 %vm316_vm3, %v3487_v37  ;;  %3265 = vmatpush3.bf16.msra.mxu0 %v1884_v2  ;;  %v2014_v0 = vsel %vm679_vm5, %v2004_v1, %v2006_v30  ;;  %v3491_v37 = vld [vmem:[%s4324_s1 + $0x70] sm:$0xff]  }
 0x365   : > { %1898 = vmatpush1.bf16.msra.mxu1 %v1882_v42  ;;  %1929 = vmatprep.mubr.bf16.mxu1 %v3509_v31 }
 0x366   : > { %v2000_v43 = vpop.permute.xlu0 %1999  ;;  %3266 = vmatprep.subr.bf16.mxu0 %v3508_v27  ;;  %3268 = vmatprep.mubr.msk.bf16.mxu0 %vm3511_vm0, %v3508_v27 }
 0x367   : > { %v2010_v44 = vpop.permute.xlu1 %2009  ;;  %v2012_v52 = vsel %vm679_vm5, %v1998_v34, %v2000_v43 }
 0x36a   : > { %v1879_v46 = vpop.permute.xlu0 %1878 }
 0x36b   : > { %v4164_v47 = vpop.permute.xlu1 %2245  ;;  %v1886_v49 = vsel %vm549_vm4, %v1877_v32, %v1879_v46 }
 0x36c   : > { %1899 = vmatprep.subr.bf16.mxu1 %v1886_v49  ;;  %v3492_v49 = vld [vmem:[%s4324_s1 + $0x78] sm:$0xff]  }
 0x36d   : > { %1900 = vmatpush1.bf16.msra.mxu1 %v1885_v50 }
 0x36e   : > { %2026 = vmatprep.subr.bf16.mxu1 %v2012_v52  ;;  %v1881_v53 = vpop.permute.xlu0 %1880 }
 0x36f   : > { %v1887_v54 = vsel %vm549_vm4, %v1879_v46, %v1881_v53  ;;  %v2250_v56 = vpop.permute.xlu1 %2249 }
 0x370   : > { %3057 = vmatmul.mubr.msk.bf16.vlgmr.msra.gmra.mrb[8].mxu1 %vm316_vm3, %v3488_v51  ;;  %3267 = vmatpush3.bf16.msra.mxu0 %v1887_v54 }
 0x371   : > { %2027 = vmatpush1.bf16.msra.mxu1 %v2011_v57  ;;  %3272 = vmatprep.subr.bf16.mxu0 %v3508_v27 }
 0x372   : > { %v2002_v36 = vpop.permute.xlu0 %2001  ;;  %2058 = vmatprep.mubr.bf16.mxu1 %v3509_v31 }
 0x373   : > { %v2013_v58 = vsel %vm679_vm5, %v2000_v43, %v2002_v36  ;;  %v4178_v23 = vpop.permute.xlu1 %2372  ;;  %3269 = vmatmul.mubr.msk.bf16.vlgmr.msra.gmra.mrb[12].mxu0 %vm316_vm3, %v3488_v51 }
 0x374   : > { %3273 = vmatpush3.bf16.msra.mxu0 %v2013_v58  ;;  %3276 = vmatprep.mubr.msk.bf16.mxu0 %vm3511_vm0, %v3508_v27 }
 0x375   : > { %3274 = vmatprep.subr.bf16.mxu0 %v3508_v27 }
 0x376   : > { %v2008_v18 = vpop.permute.xlu0 %2007 }
 0x377   : > { %v2016_v32 = vsel %vm679_vm5, %v2008_v18, %v2010_v44  ;;  %v2371_v19 = vpop.permute.xlu1 %2370  ;;  %v2015_v62 = vsel %vm679_vm5, %v2006_v30, %v2008_v18  ;;  %v3493_v18 = vld [vmem:[%s4324_s1 + $0x80] sm:$0xff]  }
 0x378   : > { %2028 = vmatprep.subr.bf16.mxu1 %v2015_v62  ;;  %3275 = vmatpush3.bf16.msra.mxu0 %v2016_v32  ;;  %v2386_v2 = vsel %vm1056_vm7, %v2371_v19, %v4178_v23 }
 0x379   : > { %2029 = vmatpush1.bf16.msra.mxu1 %v2014_v0  ;;  %3280 = vmatprep.subr.bf16.mxu0 %v3508_v27 }
 0x37a   : > { %2127 = vmatprep.subr.bf16.mxu1 %v3967_v5  ;;  %v2244_v6 = vpop.permute.xlu0 %2243 }
 0x37b   : > { %v2252_v11 = vpop.permute.xlu1 %2251 }
 0x37c   : > { %3062 = vmatmul.mubr.msk.bf16.vlgmr.msra.gmra.mrb[8].mxu1 %vm316_vm3, %v3489_v35  ;;  %v2260_v28 = vsel %vm926_vm6, %v2250_v56, %v2252_v11 }
 0x37d   : > { %2128 = vmatpush1.bf16.msra.mxu1 %v3965_v33  ;;  %2159 = vmatprep.mubr.bf16.mxu1 %v3509_v31  ;;  %v2258_v33 = vsel %vm926_vm6, %v2244_v6, %v4164_v47 }
 0x37e   : > { %2129 = vmatprep.subr.bf16.mxu1 %v4013_v17  ;;  %v2242_v7 = vpop.permute.xlu0 %2241  ;;  %v3490_v17 = vld [vmem:[%s4324_s1 + $0x68] sm:$0xff]  }
 0x37f   : > { %v2379_v9 = vpop.permute.xlu1 %2378  ;;  %3277 = vmatmul.mubr.msk.bf16.vlgmr.msra.gmra.mrb[12].mxu0 %vm316_vm3, %v3489_v35 }
 0x380   : > { %3281 = vmatpush3.bf16.msra.mxu0 %v4009_v41  ;;  %3284 = vmatprep.mubr.msk.bf16.mxu0 %vm3511_vm0, %v3508_v27 }
 0x381   : > { %2130 = vmatpush1.bf16.msra.mxu1 %v4007_v40  ;;  %3282 = vmatprep.subr.bf16.mxu0 %v3508_v27  ;;  %v2257_v40 = vsel %vm926_vm6, %v2242_v7, %v2244_v6 }
 0x382   : > { %2272 = vmatprep.subr.bf16.mxu1 %v2258_v33  ;;  %v2254_v5 = vpop.permute.xlu0 %2253 }
 0x383   : > { %v2502_v14 = vpop.permute.xlu1 %2501  ;;  %v2261_v25 = vsel %vm926_vm6, %v2252_v11, %v2254_v5 }
 0x384   : > { %3283 = vmatpush3.bf16.msra.mxu0 %v4004_v20 }
 0x385   : > { %3288 = vmatprep.subr.bf16.mxu0 %v3508_v27 }
 0x386   : > { %v2248_v41 = vpop.permute.xlu0 %2247 }
 0x387   : > { %v2381_v34 = vpop.permute.xlu1 %2380  ;;  %v2259_v20 = vsel %vm926_vm6, %v4164_v47, %v2248_v41 }
 0x388   : > { %3067 = vmatmul.mubr.msk.bf16.vlgmr.msra.gmra.mrb[8].mxu1 %vm316_vm3, %v3490_v17  ;;  %v2389_v43 = vsel %vm1056_vm7, %v2379_v9, %v2381_v34 }
 0x389   : > { %2273 = vmatpush1.bf16.msra.mxu1 %v2257_v40  ;;  %2304 = vmatprep.mubr.bf16.mxu1 %v3509_v31  ;;  %v3495_v40 = vld [vmem:[%s4325_s2 + $0x10] sm:$0xff]  }
 0x38a   : > { %2274 = vmatprep.subr.bf16.mxu1 %v2261_v25  ;;  %v2375_v22 = vpop.permute.xlu0 %2374 }
 0x38b   : > { %3285 = vmatmul.mubr.msk.bf16.vlgmr.msra.gmra.mrb[12].mxu0 %vm316_vm3, %v3490_v17  ;;  %v2387_v24 = vsel %vm1056_vm7, %v4178_v23, %v2375_v22  ;;  %v2500_v29 = vpop.permute.xlu1 %2499 }
 0x38c   : > { %3289 = vmatpush3.bf16.msra.mxu0 %v2259_v20  ;;  %3292 = vmatprep.mubr.msk.bf16.mxu0 %vm3511_vm0, %v3508_v27  ;;  %v2515_v53 = vsel %vm1186_vm8, %v2500_v29, %v2502_v14 }
 0x38d   : > { %2275 = vmatpush1.bf16.msra.mxu1 %v2260_v28  ;;  %3290 = vmatprep.subr.bf16.mxu0 %v3508_v27 }
 0x38e   : > { %2401 = vmatprep.subr.bf16.mxu1 %v2387_v24  ;;  %v2256_v30 = vpop.permute.xlu0 %2255 }
 0x38f   : > { %v2262_v16 = vsel %vm926_vm6, %v2254_v5, %v2256_v30  ;;  %v2508_v4 = vpop.permute.xlu1 %2507  ;;  %v3494_v5 = vld [vmem:[%s4324_s1 + $0x88] sm:$0xff]  }
 0x390   : > { %3291 = vmatpush3.bf16.msra.mxu0 %v2262_v16 }
 0x391   : > { %3296 = vmatprep.subr.bf16.mxu0 %v3508_v27 }
 0x392   : > { %v2383_v38 = vpop.permute.xlu0 %2382 }
 0x393   : > { %v2390_v39 = vsel %vm1056_vm7, %v2381_v34, %v2383_v38  ;;  %v2510_v44 = vpop.permute.xlu1 %2509 }
 0x394   : > { %3072 = vmatmul.mubr.msk.bf16.vlgmr.msra.gmra.mrb[8].mxu1 %vm316_vm3, %v3491_v37  ;;  %v2518_v57 = vsel %vm1186_vm8, %v2508_v4, %v2510_v44 }
 0x395   : > { %2402 = vmatpush1.bf16.msra.mxu1 %v2386_v2  ;;  %2433 = vmatprep.mubr.bf16.mxu1 %v3509_v31 }
 0x396   : > { %2403 = vmatprep.subr.bf16.mxu1 %v2390_v39  ;;  %v2377_v1 = vpop.permute.xlu0 %2376 }
 0x397   : > { %v2388_v42 = vsel %vm1056_vm7, %v2375_v22, %v2377_v1  ;;  %3293 = vmatmul.mubr.msk.bf16.vlgmr.msra.gmra.mrb[12].mxu0 %vm316_vm3, %v3491_v37  ;;  %v2631_v51 = vpop.permute.xlu1 %2630 }
 0x398   : > { %3297 = vmatpush3.bf16.msra.mxu0 %v2388_v42  ;;  %3300 = vmatprep.mubr.msk.bf16.mxu0 %vm3511_vm0, %v3508_v27 }
 0x399   : > { %2404 = vmatpush1.bf16.msra.mxu1 %v2389_v43  ;;  %3298 = vmatprep.subr.bf16.mxu0 %v3508_v27 }
 0x39a   : > { %v2504_v46 = vpop.permute.xlu0 %2503 }
 0x39b   : > { %v2516_v47 = vsel %vm1186_vm8, %v2502_v14, %v2504_v46  ;;  %v2629_v36 = vpop.permute.xlu1 %2628 }
 0x39c   : > { %2530 = vmatprep.subr.bf16.mxu1 %v2516_v47  ;;  %v2644_v0 = vsel %vm1316_vm9, %v2629_v36, %v2631_v51 }
 0x39e   : > { %v2385_v50 = vpop.permute.xlu0 %2384 }
 0x39f   : > { %v2391_v52 = vsel %vm1056_vm7, %v2383_v38, %v2385_v50  ;;  %v2639_v19 = vpop.permute.xlu1 %2638 }
 0x3a0   : > { %3077 = vmatmul.mubr.msk.bf16.vlgmr.msra.gmra.mrb[8].mxu1 %vm316_vm3, %v3492_v49  ;;  %3299 = vmatpush3.bf16.msra.mxu0 %v2391_v52 }
 0x3a1   : > { %2531 = vmatpush1.bf16.msra.mxu1 %v2515_v53  ;;  %3304 = vmatprep.subr.bf16.mxu0 %v3508_v27 }
 0x3a2   : > { %v2512_v54 = vpop.permute.xlu0 %2511  ;;  %2562 = vmatprep.mubr.bf16.mxu1 %v3509_v31 }
 0x3a3   : > { %v2519_v56 = vsel %vm1186_vm8, %v2510_v44, %v2512_v54  ;;  %3301 = vmatmul.mubr.msk.bf16.vlgmr.msra.gmra.mrb[12].mxu0 %vm316_vm3, %v3492_v49  ;;  %v2637_v11 = vpop.permute.xlu1 %2636 }
 0x3a4   : > { %2532 = vmatprep.subr.bf16.mxu1 %v2519_v56  ;;  %3308 = vmatprep.mubr.msk.bf16.mxu0 %vm3511_vm0, %v3508_v27  ;;  %v2647_v33 = vsel %vm1316_vm9, %v2637_v11, %v2639_v19 }
 0x3a5   : > { %2533 = vmatpush1.bf16.msra.mxu1 %v2518_v57 }
 0x3a6   : > { %v2506_v58 = vpop.permute.xlu0 %2505 }
 0x3a7   : > { %v2517_v23 = vsel %vm1186_vm8, %v2504_v46, %v2506_v58  ;;  %v2643_v41 = vpop.permute.xlu1 %2642 }
 0x3a8   : > { %3305 = vmatpush3.bf16.msra.mxu0 %v2517_v23 }
 0x3a9   : > { %3306 = vmatprep.subr.bf16.mxu0 %v3508_v27 }
 0x3aa   : > { %v2633_v32 = vpop.permute.xlu0 %2632 }
 0x3ab   : > { %v2645_v62 = vsel %vm1316_vm9, %v2631_v51, %v2633_v32 }
 0x3ac   : > { %3082 = vmatmul.mubr.msk.bf16.vlgmr.msra.gmra.mrb[8].mxu1 %vm316_vm3, %v3493_v18  ;;  %2659 = vmatprep.subr.bf16.mxu1 %v2645_v62 }
 0x3ad   : > { %2660 = vmatpush1.bf16.msra.mxu1 %v2644_v0  ;;  %2691 = vmatprep.mubr.bf16.mxu1 %v3509_v31 }
 0x3ae   : > { %v2514_v35 = vpop.permute.xlu0 %2513 }
 0x3af   : > { %v2520_v6 = vsel %vm1186_vm8, %v2512_v54, %v2514_v35 }
 0x3b0   : > { %3307 = vmatpush3.bf16.msra.mxu0 %v2520_v6 }
 0x3b1   : > { %3312 = vmatprep.subr.bf16.mxu0 %v3508_v27 }
 0x3b2   : > { %v2641_v7 = vpop.permute.xlu0 %2640 }
 0x3b3   : > { %3309 = vmatmul.mubr.msk.bf16.vlgmr.msra.gmra.mrb[12].mxu0 %vm316_vm3, %v3493_v18  ;;  %v2648_v9 = vsel %vm1316_vm9, %v2639_v19, %v2641_v7  ;;  %v2649_v34 = vsel %vm1316_vm9, %v2641_v7, %v2643_v41 }
 0x3b4   : > { %2661 = vmatprep.subr.bf16.mxu1 %v2648_v9  ;;  %3316 = vmatprep.mubr.msk.bf16.mxu0 %vm3511_vm0, %v3508_v27 }
 0x3b5   : > { %2662 = vmatpush1.bf16.msra.mxu1 %v2647_v33 }
 0x3b6   : > { %v2635_v14 = vpop.permute.xlu0 %2634 }
 0x3b7   : > { %v2646_v17 = vsel %vm1316_vm9, %v2633_v32, %v2635_v14 }
 0x3b8   : > { %3087 = vmatmul.mubr.msk.bf16.vlgmr.msra.gmra.mrb[8].mxu1 %vm316_vm3, %v3494_v5  ;;  %3313 = vmatpush3.bf16.msra.mxu0 %v2646_v17 }
 0x3b9   : > { %3314 = vmatprep.subr.bf16.mxu0 %v3508_v27  ;;  %2817 = vmatprep.mubr.bf16.mxu1 %v3509_v31 }
 0x3bc   : > { %3315 = vmatpush3.bf16.msra.mxu0 %v2649_v34 }
 0x3bf   : > { %3317 = vmatmul.mubr.msk.bf16.vlgmr.msra.gmra.mrb[12].mxu0 %vm316_vm3, %v3494_v5 }
 0x3c0   : > { %3322 = vmatprep.mubr.msk.bf16.mxu0 %vm1451_vm10, %v3495_v40 }
 0x48b   : > { %v2693_v25 = vpop.f32.mrb[8].mxu1 }
 0x48c   : > { %v2695_v22 = vpop.f32.mrb[9].mxu1  ;;  %v2749_v24 = vmax.f32 %v2693_v25, 0.0 }
 0x48d   : > { %v2697_v20 = vpop.f32.mrb[10].mxu1  ;;  %v2750_v27 = vmax.f32 %v2695_v22, 0.0 }
 0x48e   : > { %v2752_v28 = vmax.f32 %v2697_v20, 0.0  ;;  %v2699_v29 = vpop.f32.mrb[11].mxu1 }
 0x48f   : > { %v2753_v30 = vmax.f32 %v2699_v29, 0.0 }
 0x490   : > { %v3099_v16 = vpack.c.bf16 %v2752_v28, %v2749_v24 }
 0x491   : > { %v3096_v37 = vpack.c.bf16 %v2753_v30, %v2750_v27 }
 0x492   : > { %v2736_v38 = vpop.f32.mrb[12].mxu0 }
 0x493   : > { %v3318_v4 = vpop.f32.mrb[13].mxu0  ;;  %3097 = vmatprep.subr.msk.bf16.mxu1 %vm3918_vm14, %v3096_v37  ;;  %v2751_v2 = vmax.f32 %v2736_v38, 0.0 }
 0x494   : > { %v2739_v39 = vpop.f32.mrb[14].mxu0  ;;  %3100 = vmatpush1.bf16.msk.msra.mxu1 %vm3922_vm15, %v3099_v16 }
 0x495   : > { %v2754_v1 = vmax.f32 %v2739_v39, 0.0  ;;  %v3319_v42 = vpop.f32.mrb[15].mxu0 }
 0x497   : > { %v3104_v43 = vpack.c.bf16 %v2754_v1, %v2751_v2  ;;  %3101 = vmatmul.mubr.msk.bf16.vlgmr.msra.gmra.mrb[12].mxu1 %vm1451_vm10, %v3495_v40 }
 0x498   : > { %2827 = vmatprep.mubr.bf16.mxu1 %v3509_v31 }
 0x499   : > { %3320 = vmatprep.subr.msk.bf16.mxu0 %vm3932_vm12, %v3104_v43 }
 0x49a   : > { %3321 = vmatpush3.bf16.msk.msra.mxu0 %vm3932_vm12, %v3104_v43 }
 0x49d   : > { %3323 = vmatmul.mubr.msk.bf16.vlgmr.msra.gmra.mrb[16].mxu0 %vm1451_vm10, %v3496_v45 }
 0x49f   : > { %3102 = vmatmul.mubr.msk.bf16.gmra.mrb[16].mxu1 %vm1451_vm10, %v3496_v45 }
 0x56a   : > { %v2819_v48 = vpop.f32.mrb[12].mxu1 }
 0x56b   : > { %v2887_v31 = vadd.f32 %v2819_v48, %v3950_v59  ;;  %v2821_v44 = vpop.f32.mrb[13].mxu1 }
 0x56c   : > { %v2888_v46 = vadd.f32 %v2821_v44, %v3953_v60  ;;  %v2823_v47 = vpop.f32.mrb[14].mxu1 }
 0x56d   : > { %v2899_v49 = vmax.f32 %v2887_v31, 0.0  ;;  %v2890_v50 = vadd.f32 %v2823_v47, %v3957_v61  ;;  %v2825_v51 = vpop.f32.mrb[15].mxu1 }
 0x56e   : > { %v2900_v55 = vmax.f32 %v2888_v46, 0.0  ;;  %v2891_v52 = vadd.f32 %v2825_v51, %v3961_v63 }
 0x56f   : > { %2911 = vst [vmem:[%s3559_s24] sm:$0xff] %v2899_v49  ;;  %v2902_v53 = vmax.f32 %v2890_v50, 0.0 }
 0x570   : > { %2912 = vst [vmem:[%s3559_s24 + $0x8] sm:$0xff] %v2900_v55  ;;  %v2903_v54 = vmax.f32 %v2891_v52, 0.0  ;;  %v3324_v56 = vpop.f32.mrb[16].mxu0 }
 0x571   : > { %2914 = vst [vmem:[%s3559_s24 + $0x18] sm:$0xff] %v2902_v53  ;;  %v2895_v59 = vadd.f32 %v3324_v56, %v3970_v8  ;;  %v2872_v57 = vpop.f32.mrb[17].mxu0 }
 0x572   : > { %2915 = vst [vmem:[%s3559_s24 + $0x20] sm:$0xff] %v2903_v54  ;;  %v2889_v60 = vadd.f32 %v2872_v57, %v3976_v12  ;;  %v2829_v36 = vpop.f32.mrb[16].mxu1  ;;  %v3325_v61 = vpop.f32.mrb[18].mxu0 }
 0x573   : > { %v2907_v58 = vmax.f32 %v2895_v59, 0.0  ;;  %v2893_v23 = vadd.f32 %v2829_v36, %v3973_v10  ;;  %v2898_v63 = vadd.f32 %v3325_v61, %v3984_v21  ;;  %v2831_v18 = vpop.f32.mrb[17].mxu1  ;;  %v2875_v32 = vpop.f32.mrb[19].mxu0 }
 0x574   : > { %v2901_v19 = vmax.f32 %v2889_v60, 0.0  ;;  %v2894_v8 = vadd.f32 %v2831_v18, %v3981_v15  ;;  %v2892_v62 = vadd.f32 %v2875_v32, %v3991_v13  ;;  %v2833_v12 = vpop.f32.mrb[18].mxu1 }
 0x575   : > { %2919 = vst [vmem:[%s3559_s24 + $0x40] sm:$0xff] %v2907_v58  ;;  %v2905_v0 = vmax.f32 %v2893_v23, 0.0  ;;  %v2910_v35 = vmax.f32 %v2898_v63, 0.0  ;;  %v2896_v10 = vadd.f32 %v2833_v12, %v3988_v3  ;;  %v2835_v21 = vpop.f32.mrb[19].mxu1 }
 0x576   : > { %2913 = vst [vmem:[%s3559_s24 + $0x10] sm:$0xff] %v2901_v19  ;;  %v2906_v6 = vmax.f32 %v2894_v8, 0.0  ;;  %v2904_v11 = vmax.f32 %v2892_v62, 0.0  ;;  %v2897_v7 = vadd.f32 %v2835_v21, %v3997_v26 }
 0x577   : > { %2917 = vst [vmem:[%s3559_s24 + $0x30] sm:$0xff] %v2905_v0  ;;  %2922 = vst [vmem:[%s3559_s24 + $0x58] sm:$0xff] %v2910_v35  ;;  %v2908_v15 = vmax.f32 %v2896_v10, 0.0 }
 0x578   : > { %2918 = vst [vmem:[%s3559_s24 + $0x38] sm:$0xff] %v2906_v6  ;;  %2916 = vst [vmem:[%s3559_s24 + $0x28] sm:$0xff] %v2904_v11  ;;  %v2909_v13 = vmax.f32 %v2897_v7, 0.0 }
 0x579   : > { %2920 = vst [vmem:[%s3559_s24 + $0x48] sm:$0xff] %v2908_v15 }
 0x57a   : > { %2921 = vst [vmem:[%s3559_s24 + $0x50] sm:$0xff] %v2909_v13 }
 0x57b PF: > { %s14_s15 = sadd.s32 1, %s3504_s15  }
 0x57c   : > { %p11_p5 = scmp.ge.s32.totalorder %s14_s15, 4  }
 0x57e   :  { %13 = sbr.rel (!%p11_p5) target bundleno = 1 (0x1), region = 88 }

</bundles_post_ra>
